<compile_context>
chip_gen: v7x
topology: tpu7x:2x2x1
jax: 0.10.0
libtpu: 0.0.40
codegen_flags: <defaults>
</compile_context>

<pallas_src>
import math
from functools import partial

import jax
import jax.numpy as jnp
from jax import lax
from jax.experimental import pallas as pl
from jax.experimental.pallas import tpu as pltpu


# ----------------------------------------------------------------------------
# In-kernel math helpers (all lower to VPU / EUP ops)
# ----------------------------------------------------------------------------

_SQRT_HALF = 0.7071067811865476


def _erf_poly(x):
    # Abramowitz & Stegun 7.1.26, max abs error ~1.5e-7. Uses only VPU + EUP exp,
    # so it lowers cleanly in Mosaic (no erf primitive needed).
    a1, a2, a3 = 0.254829592, -0.284496736, 1.421413741
    a4, a5, p = -1.453152027, 1.061405429, 0.3275911
    ax = jnp.abs(x)
    t = 1.0 / (1.0 + p * ax)
    poly = ((((a5 * t + a4) * t + a3) * t + a2) * t + a1) * t
    y = 1.0 - poly * jnp.exp(-ax * ax)
    return jnp.where(x < 0.0, -y, y)


def _gelu(x):
    # exact (erf-based) GELU matching torch nn.GELU() default, via erf polynomial
    return 0.5 * x * (1.0 + _erf_poly(x * _SQRT_HALF))


def _layernorm(h, g, b, eps):
    mu = jnp.mean(h, axis=-1, keepdims=True)
    d = h - mu
    var = jnp.mean(d * d, axis=-1, keepdims=True)
    return d * lax.rsqrt(var + eps) * g + b


# ----------------------------------------------------------------------------
# Fused forward kernel.
# Grid = (batch, layer). One grid step = one encoder layer of one batch row.
# Per-layer weights stream through VMEM (double-buffered by the pipeline);
# the residual activation is carried across layer steps in a VMEM scratch.
# ----------------------------------------------------------------------------

def _fused_forward_kernel(
    x_ref,                              # (1, S, H)  embedding sum for this batch elem
    emb_g_ref, emb_b_ref,               # (1, H)
    wqkv_ref, bqkv_ref,                 # (1, H, 3H) bf16, (1, 1, 3H) f32 (scale folded into q)
    wo_ref, bo_ref,                     # (1, heads, dh, H) bf16, (1, 1, H) f32
    ln1_g_ref, ln1_b_ref,               # (1, 1, H)
    wi_ref, bi_ref,                     # (1, H, I) bf16, (1, 1, I) f32
    wf_ref, bf_ref,                     # (1, I, H) bf16, (1, 1, H) f32
    ln2_g_ref, ln2_b_ref,               # (1, 1, H)
    wh_ref, bh_ref,                     # (H, P) bf16, (1, P) f32   combined action+value head
    pooled_ref,                         # out (1, 1, H)
    head_ref,                           # out (1, 1, P)
    x_state,                            # scratch VMEM (S, H) f32 — residual carried across layers
    *, heads, eps):
    l = pl.program_id(1)
    H = x_ref.shape[2]
    dh = H // heads

    # --- embedding LayerNorm (first layer step only; no residual, no zero array) ---
    @pl.when(l == 0)
    def _():
        x_state[...] = _layernorm(x_ref[0], emb_g_ref[...], emb_b_ref[...], eps)

    x = x_state[...]                                                    # (S, H) f32
    xb = x.astype(jnp.bfloat16)

    # --- merged QKV projection (bf16 operands, f32 accumulate); softmax scale
    #     already folded into wq / bq at pack time ---
    qkv = jnp.dot(xb, wqkv_ref[0], preferred_element_type=jnp.float32) + bqkv_ref[0]

    def split_heads(m2d):               # (S, H) f32 -> (heads, S, dh) bf16
        return jnp.stack(
            [m2d[:, h * dh:(h + 1) * dh] for h in range(heads)], axis=0
        ).astype(jnp.bfloat16)

    q3 = split_heads(qkv[:, 0 * H:1 * H])
    k3 = split_heads(qkv[:, 1 * H:2 * H])
    v3 = split_heads(qkv[:, 2 * H:3 * H])

    # --- batched-head attention, fully in vregs (no ctx scratch round-trip) ---
    s = jnp.einsum('hqd,hkd->hqk', q3, k3,
                   preferred_element_type=jnp.float32)                  # (heads, S, S)
    s = s - jnp.max(s, axis=-1, keepdims=True)
    p = jnp.exp(s)
    denom = jnp.sum(p, axis=-1, keepdims=True)
    p = p * pl.reciprocal(denom, approx=True)                           # EUP divide
    ctx3 = jnp.einsum('hqk,hkd->hqd', p.astype(jnp.bfloat16), v3,
                      preferred_element_type=jnp.float32)               # (heads, S, dh)

    # output projection with per-head-packed wo (heads, dh, H); sum over heads
    # is mathematically identical to concat-over-heads followed by (H,H) matmul
    attn = jnp.sum(
        jnp.einsum('hqd,hdm->hqm', ctx3.astype(jnp.bfloat16), wo_ref[0],
                   preferred_element_type=jnp.float32),
        axis=0) + bo_ref[0]                                             # (S, H)
    x = _layernorm(attn + x, ln1_g_ref[0], ln1_b_ref[0], eps)

    # --- FFN (bf16 matmuls, fp32 GELU / LayerNorm) ---
    inter = _gelu(jnp.dot(x.astype(jnp.bfloat16), wi_ref[0],
                          preferred_element_type=jnp.float32) + bi_ref[0])
    ffn = jnp.dot(inter.astype(jnp.bfloat16), wf_ref[0],
                  preferred_element_type=jnp.float32) + bf_ref[0]
    x = _layernorm(ffn + x, ln2_g_ref[0], ln2_b_ref[0], eps)
    x_state[...] = x

    # --- mean pool + combined action/value head on the last layer step ---
    @pl.when(l == pl.num_programs(1) - 1)
    def _():
        pooled = jnp.mean(x, axis=0, keepdims=True)                     # (1, H)
        pooled_ref[0] = pooled
        head = _gelu(jnp.dot(pooled.astype(jnp.bfloat16), wh_ref[...],
                             preferred_element_type=jnp.float32) + bh_ref[...])
        head_ref[0] = head


# ----------------------------------------------------------------------------
# pallas_call wrapper
# ----------------------------------------------------------------------------

_CONST_KEYS = ("emb_g", "emb_b")
_LAYER_KEYS = ("wqkv", "bqkv", "wo", "bo", "ln1_g", "ln1_b",
               "wi", "bi", "wf", "bf", "ln2_g", "ln2_b")
_HEAD_KEYS = ("wh", "bh")


def _const_spec(shape):
    nd = len(shape)
    return pl.BlockSpec(tuple(shape), lambda b, l: (0,) * nd)


def _layer_spec(shape):
    nd = len(shape)
    return pl.BlockSpec((1,) + tuple(shape[1:]),
                        lambda b, l: (l,) + (0,) * (nd - 1))


def _vmem_limit_bytes(packed, S, H):
    # per-layer weight blocks are double-buffered by the pipeline; constants and
    # the activation state are single copies. Clamp to <= 48 MiB (v7x physical
    # VMEM is 64 MiB).
    per_layer = sum(int(packed[k].nbytes) // int(packed[k].shape[0])
                    for k in _LAYER_KEYS)
    const = sum(int(packed[k].nbytes) for k in _CONST_KEYS + _HEAD_KEYS)
    act = 8 * S * H * 4                     # input block, scratch, working headroom
    est = 2 * per_layer + 2 * const + act + (8 << 20)
    return int(min(max(est, 32 << 20), 48 << 20))


def fused_forward_pallas(emb, packed, *, heads):
    """emb: (B, S, H) f32 embedding sum. Returns (pooled [B,H], head_out [B,P])."""
    B, S, H = emb.shape
    L = packed["wqkv"].shape[0]
    P = packed["wh"].shape[1]

    weight_keys = _CONST_KEYS + _LAYER_KEYS + _HEAD_KEYS
    weights = [packed[k] for k in weight_keys]

    in_specs = [pl.BlockSpec((1, S, H), lambda b, l: (b, 0, 0))]
    for k in _CONST_KEYS:
        in_specs.append(_const_spec(packed[k].shape))
    for k in _LAYER_KEYS:
        in_specs.append(_layer_spec(packed[k].shape))   # streamed per layer
    for k in _HEAD_KEYS:
        in_specs.append(_const_spec(packed[k].shape))

    out_shape = (jax.ShapeDtypeStruct((B, 1, H), jnp.float32),
                 jax.ShapeDtypeStruct((B, 1, P), jnp.float32))
    out_specs = (pl.BlockSpec((1, 1, H), lambda b, l: (b, 0, 0)),
                 pl.BlockSpec((1, 1, P), lambda b, l: (b, 0, 0)))

    pooled3, head3 = pl.pallas_call(
        partial(_fused_forward_kernel, heads=heads, eps=1e-12),
        out_shape=out_shape,
        grid=(B, L),
        in_specs=in_specs,
        out_specs=out_specs,
        scratch_shapes=[pltpu.VMEM((S, H), jnp.float32)],
        compiler_params=pltpu.CompilerParams(
            dimension_semantics=("parallel", "arbitrary"),
            vmem_limit_bytes=_vmem_limit_bytes(packed, S, H)),
    )(emb, *weights)
    return pooled3[:, 0, :], head3[:, 0, :]


# ----------------------------------------------------------------------------
# Parameters (deterministic synthetic, mirroring the torch module layout)
# ----------------------------------------------------------------------------

def init_params(key, *, vocab, max_pos, hidden, layers, heads, inter, num_outputs):
    del heads
    keys = iter(jax.random.split(key, 8 + 6 * layers))

    def dense(k, fan_in, fan_out):
        w = jax.random.normal(k, (fan_in, fan_out), jnp.float32) * 0.02
        b = jnp.zeros((fan_out,), jnp.float32)
        return w, b

    p = {
        "word_emb": jax.random.normal(next(keys), (vocab, hidden), jnp.float32) * 0.02,
        "pos_emb": jax.random.normal(next(keys), (max_pos, hidden), jnp.float32) * 0.02,
        "type_emb": jax.random.normal(next(keys), (2, hidden), jnp.float32) * 0.02,
        "emb_ln_g": jnp.ones((hidden,), jnp.float32),
        "emb_ln_b": jnp.zeros((hidden,), jnp.float32),
        "layers": [],
    }
    for _ in range(layers):
        Ld = {}
        Ld["wq"], Ld["bq"] = dense(next(keys), hidden, hidden)
        Ld["wk"], Ld["bk"] = dense(next(keys), hidden, hidden)
        Ld["wv"], Ld["bv"] = dense(next(keys), hidden, hidden)
        Ld["wo"], Ld["bo"] = dense(next(keys), hidden, hidden)
        Ld["ln1_g"] = jnp.ones((hidden,), jnp.float32)
        Ld["ln1_b"] = jnp.zeros((hidden,), jnp.float32)
        Ld["wi"], Ld["bi"] = dense(next(keys), hidden, inter)
        Ld["wf"], Ld["bf"] = dense(next(keys), inter, hidden)
        Ld["ln2_g"] = jnp.ones((hidden,), jnp.float32)
        Ld["ln2_b"] = jnp.zeros((hidden,), jnp.float32)
        p["layers"].append(Ld)
    p["w_act"], p["b_act"] = dense(next(keys), hidden, num_outputs)   # action_outputs
    p["w_val"], p["b_val"] = dense(next(keys), hidden, 1)             # value_network
    return p


def pack_params(p, *, heads, head_pad=128):
    """Pack per-layer weights into stacked arrays (layer axis first), fold the
    1/sqrt(dh) softmax scale into wq/bq, convert matmul weights to bf16, pack
    wo per-head as (L, heads, dh, H), and build a single lane-dense head."""
    layers = p["layers"]
    H = p["word_emb"].shape[1]
    dh = H // heads
    scale = 1.0 / math.sqrt(dh)

    def stk(fn):
        return jnp.stack([fn(Ld) for Ld in layers], axis=0)

    packed = {
        "word_emb": p["word_emb"],
        "pos_emb": p["pos_emb"],
        "type_emb": p["type_emb"],
        "emb_g": p["emb_ln_g"].reshape(1, -1),
        "emb_b": p["emb_ln_b"].reshape(1, -1),
        # merged QKV, softmax scale folded into the q columns, bf16 weights
        "wqkv": stk(lambda L: jnp.concatenate(
            [L["wq"] * scale, L["wk"], L["wv"]], axis=1)).astype(jnp.bfloat16),
        "bqkv": stk(lambda L: jnp.concatenate(
            [L["bq"] * scale, L["bk"], L["bv"]], axis=0).reshape(1, -1)),
        # output projection packed per head: rows (h*dh + d) -> (heads, dh, H)
        "wo": stk(lambda L: L["wo"].reshape(heads, dh, H)).astype(jnp.bfloat16),
        "bo": stk(lambda L: L["bo"].reshape(1, -1)),
        "ln1_g": stk(lambda L: L["ln1_g"].reshape(1, -1)),
        "ln1_b": stk(lambda L: L["ln1_b"].reshape(1, -1)),
        "wi": stk(lambda L: L["wi"]).astype(jnp.bfloat16),
        "bi": stk(lambda L: L["bi"].reshape(1, -1)),
        "wf": stk(lambda L: L["wf"]).astype(jnp.bfloat16),
        "bf": stk(lambda L: L["bf"].reshape(1, -1)),
        "ln2_g": stk(lambda L: L["ln2_g"].reshape(1, -1)),
        "ln2_b": stk(lambda L: L["ln2_b"].reshape(1, -1)),
    }
    _, no = p["w_act"].shape
    assert no + 1 <= head_pad
    wh = jnp.zeros((H, head_pad), jnp.float32)
    wh = wh.at[:, :no].set(p["w_act"]).at[:, no:no + 1].set(p["w_val"])
    bh = jnp.zeros((1, head_pad), jnp.float32)
    bh = bh.at[0, :no].set(p["b_act"]).at[0, no].set(p["b_val"][0])
    packed["wh"] = wh.astype(jnp.bfloat16)
    packed["bh"] = bh
    return packed


# ----------------------------------------------------------------------------
# Forward (JAX glue: embedding gather only; everything else is one pallas_call)
# ----------------------------------------------------------------------------

def impala_transformer_forward(packed, input_ids, *, heads, num_outputs):
    """Returns (logits, features, value) == (forward()[0], self._features, value_function())."""
    B, S = input_ids.shape
    # Embedding gather + additive position / token-type embeddings stay in JAX
    # (a vocab gather has no rectangular BlockSpec); everything downstream is fused.
    emb = (jnp.take(packed["word_emb"], input_ids, axis=0)
           + packed["pos_emb"][:S][None, :, :]
           + packed["type_emb"][0][None, None, :])                    # (B, S, H) f32

    pooled, head = fused_forward_pallas(emb, packed, heads=heads)

    logits = head[:, :num_outputs]        # GELU(action_outputs(pooled))
    value = head[:, num_outputs]          # GELU(value_network(pooled)).reshape(-1)
    return logits, pooled, value


# ----------------------------------------------------------------------------

if __name__ == "__main__":
    B, S = 2, 8
    VOCAB, MAX_POS = 64, 16
    HIDDEN, LAYERS, HEADS, INTER = 128, 2, 4, 512   # lane-dense H; dh = 32
    NUM_OUTPUTS = 6

    key = jax.random.PRNGKey(0)
    pkey, ikey = jax.random.split(key)
    params = init_params(pkey, vocab=VOCAB, max_pos=MAX_POS, hidden=HIDDEN,
                         layers=LAYERS, heads=HEADS, inter=INTER,
                         num_outputs=NUM_OUTPUTS)
    packed = pack_params(params, heads=HEADS)
    input_ids = jax.random.randint(ikey, (B, S), 0, VOCAB, dtype=jnp.int32)

    fwd = jax.jit(partial(impala_transformer_forward, heads=HEADS,
                          num_outputs=NUM_OUTPUTS))
    logits, features, value = fwd(packed, input_ids)
    jax.block_until_ready((logits, features, value))

    assert logits.shape == (B, NUM_OUTPUTS) and logits.dtype == jnp.float32
    assert features.shape == (B, HIDDEN)
    assert value.shape == (B,)
    assert bool(jnp.all(jnp.isfinite(logits)))
    assert bool(jnp.all(jnp.isfinite(features)))
    assert bool(jnp.all(jnp.isfinite(value)))
    print("KERNEL_OK")
</pallas_src>

<mosaic_0001>
module attributes {stable_mosaic.version = 11 : i64} {
  func.func @_fused_forward_kernel(%arg0: i32, %arg1: i32, %arg2: memref<1x8x128xf32, #tpu.memory_space<vmem>>, %arg3: memref<1x128xf32, #tpu.memory_space<vmem>>, %arg4: memref<1x128xf32, #tpu.memory_space<vmem>>, %arg5: memref<1x128x384xbf16, #tpu.memory_space<vmem>>, %arg6: memref<1x1x384xf32, #tpu.memory_space<vmem>>, %arg7: memref<1x4x32x128xbf16, #tpu.memory_space<vmem>>, %arg8: memref<1x1x128xf32, #tpu.memory_space<vmem>>, %arg9: memref<1x1x128xf32, #tpu.memory_space<vmem>>, %arg10: memref<1x1x128xf32, #tpu.memory_space<vmem>>, %arg11: memref<1x128x512xbf16, #tpu.memory_space<vmem>>, %arg12: memref<1x1x512xf32, #tpu.memory_space<vmem>>, %arg13: memref<1x512x128xbf16, #tpu.memory_space<vmem>>, %arg14: memref<1x1x128xf32, #tpu.memory_space<vmem>>, %arg15: memref<1x1x128xf32, #tpu.memory_space<vmem>>, %arg16: memref<1x1x128xf32, #tpu.memory_space<vmem>>, %arg17: memref<128x128xbf16, #tpu.memory_space<vmem>>, %arg18: memref<1x128xf32, #tpu.memory_space<vmem>>, %arg19: memref<1x1x128xf32, #tpu.memory_space<vmem>>, %arg20: memref<1x1x128xf32, #tpu.memory_space<vmem>>, %arg21: memref<8x128xf32, #tpu.memory_space<vmem>>) attributes {dimension_semantics = [#tpu.dimension_semantics<parallel>, #tpu.dimension_semantics<arbitrary>], iteration_bounds = array<i64: 2, 2>, scalar_prefetch = 0 : i64, scratch_operands = 1 : i64, tpu.core_type = #tpu.core_type<tc>, window_params = [{transform_indices = @transform_0, window_bounds = array<i64: 1, 8, 128>}, {pipeline_mode = #tpu.pipeline_mode<synchronous>, transform_indices = @transform_1, window_bounds = array<i64: 1, 128>}, {pipeline_mode = #tpu.pipeline_mode<synchronous>, transform_indices = @transform_2, window_bounds = array<i64: 1, 128>}, {transform_indices = @transform_3, window_bounds = array<i64: 1, 128, 384>}, {transform_indices = @transform_4, window_bounds = array<i64: 1, 1, 384>}, {transform_indices = @transform_5, window_bounds = array<i64: 1, 4, 32, 128>}, {transform_indices = @transform_6, window_bounds = array<i64: 1, 1, 128>}, {transform_indices = @transform_7, window_bounds = array<i64: 1, 1, 128>}, {transform_indices = @transform_8, window_bounds = array<i64: 1, 1, 128>}, {transform_indices = @transform_9, window_bounds = array<i64: 1, 128, 512>}, {transform_indices = @transform_10, window_bounds = array<i64: 1, 1, 512>}, {transform_indices = @transform_11, window_bounds = array<i64: 1, 512, 128>}, {transform_indices = @transform_12, window_bounds = array<i64: 1, 1, 128>}, {transform_indices = @transform_13, window_bounds = array<i64: 1, 1, 128>}, {transform_indices = @transform_14, window_bounds = array<i64: 1, 1, 128>}, {pipeline_mode = #tpu.pipeline_mode<synchronous>, transform_indices = @transform_15, window_bounds = array<i64: 128, 128>}, {pipeline_mode = #tpu.pipeline_mode<synchronous>, transform_indices = @transform_16, window_bounds = array<i64: 1, 128>}, {transform_indices = @transform_17, window_bounds = array<i64: 1, 1, 128>}, {transform_indices = @transform_18, window_bounds = array<i64: 1, 1, 128>}]} {
    %c0_i32 = arith.constant 0 : i32
    %0 = arith.cmpi eq, %arg1, %c0_i32 : i32
    %1 = arith.extui %0 : i1 to i32
    %c0_i32_0 = arith.constant 0 : i32
    %2 = arith.cmpi ne, %1, %c0_i32_0 : i32
    scf.if %2 {
      %c0_75 = arith.constant 0 : index
      %c0_76 = arith.constant 0 : index
      %c0_77 = arith.constant 0 : index
      %177 = vector.load %arg2[%c0_75, %c0_76, %c0_77] : memref<1x8x128xf32, #tpu.memory_space<vmem>>, vector<1x8x128xf32>
      %178 = vector.shape_cast %177 : vector<1x8x128xf32> to vector<8x128xf32>
      %c0_78 = arith.constant 0 : index
      %c0_79 = arith.constant 0 : index
      %179 = vector.load %arg3[%c0_78, %c0_79] : memref<1x128xf32, #tpu.memory_space<vmem>>, vector<1x128xf32>
      %c0_80 = arith.constant 0 : index
      %c0_81 = arith.constant 0 : index
      %180 = vector.load %arg4[%c0_80, %c0_81] : memref<1x128xf32, #tpu.memory_space<vmem>>, vector<1x128xf32>
      %cst_82 = arith.constant dense<0.000000e+00> : vector<8xf32>
      %181 = vector.multi_reduction <add>, %178, %cst_82 [1] : vector<8x128xf32> to vector<8xf32>
      %182 = vector.shape_cast %181 : vector<8xf32> to vector<8x1xf32>
      %cst_83 = arith.constant 1.280000e+02 : f32
      %183 = vector.broadcast %cst_83 : f32 to vector<8x1xf32>
      %184 = arith.divf %182, %183 : vector<8x1xf32>
      %185 = vector.broadcast %184 : vector<8x1xf32> to vector<8x128xf32>
      %186 = arith.subf %178, %185 : vector<8x128xf32>
      %187 = arith.mulf %186, %186 : vector<8x128xf32>
      %cst_84 = arith.constant dense<0.000000e+00> : vector<8xf32>
      %188 = vector.multi_reduction <add>, %187, %cst_84 [1] : vector<8x128xf32> to vector<8xf32>
      %189 = vector.shape_cast %188 : vector<8xf32> to vector<8x1xf32>
      %cst_85 = arith.constant 1.280000e+02 : f32
      %190 = vector.broadcast %cst_85 : f32 to vector<8x1xf32>
      %191 = arith.divf %189, %190 : vector<8x1xf32>
      %cst_86 = arith.constant 9.99999996E-13 : f32
      %192 = vector.broadcast %cst_86 : f32 to vector<8x1xf32>
      %193 = arith.addf %191, %192 : vector<8x1xf32>
      %194 = math.rsqrt %193 : vector<8x1xf32>
      %195 = vector.broadcast %194 : vector<8x1xf32> to vector<8x128xf32>
      %196 = arith.mulf %186, %195 : vector<8x128xf32>
      %197 = vector.broadcast %179 : vector<1x128xf32> to vector<8x128xf32>
      %198 = arith.mulf %196, %197 : vector<8x128xf32>
      %199 = vector.broadcast %180 : vector<1x128xf32> to vector<8x128xf32>
      %200 = arith.addf %198, %199 : vector<8x128xf32>
      %c0_87 = arith.constant 0 : index
      %c0_88 = arith.constant 0 : index
      %201 = vector.load %arg21[%c0_87, %c0_88] : memref<8x128xf32, #tpu.memory_space<vmem>>, vector<8x128xf32>
      tpu.vector_store %arg21[%c0_87, %c0_88], %200 {strides = array<i32>} : memref<8x128xf32, #tpu.memory_space<vmem>>, vector<8x128xf32>,
    } else {
    }
    %c0 = arith.constant 0 : index
    %c0_1 = arith.constant 0 : index
    %3 = vector.load %arg21[%c0, %c0_1] : memref<8x128xf32, #tpu.memory_space<vmem>>, vector<8x128xf32>
    %4 = arith.truncf %3 : vector<8x128xf32> to vector<8x128xbf16>
    %c0_2 = arith.constant 0 : index
    %c0_3 = arith.constant 0 : index
    %c0_4 = arith.constant 0 : index
    %5 = vector.load %arg5[%c0_2, %c0_3, %c0_4] : memref<1x128x384xbf16, #tpu.memory_space<vmem>>, vector<1x128x384xbf16>
    %6 = vector.shape_cast %5 : vector<1x128x384xbf16> to vector<128x384xbf16>
    %cst = arith.constant dense<0.000000e+00> : vector<8x384xf32>
    %7 = tpu.matmul %4, %6, %cst {dimension_numbers = #tpu.dot_dimension_numbers<[1], [0], [0], [1], [0, 0, 1, 1], [], []>} : vector<8x128xbf16>, vector<128x384xbf16>, vector<8x384xf32> -> vector<8x384xf32>
    %c0_5 = arith.constant 0 : index
    %c0_6 = arith.constant 0 : index
    %c0_7 = arith.constant 0 : index
    %8 = vector.load %arg6[%c0_5, %c0_6, %c0_7] : memref<1x1x384xf32, #tpu.memory_space<vmem>>, vector<1x1x384xf32>
    %9 = vector.shape_cast %8 : vector<1x1x384xf32> to vector<1x384xf32>
    %10 = vector.broadcast %9 : vector<1x384xf32> to vector<8x384xf32>
    %11 = arith.addf %7, %10 : vector<8x384xf32>
    %12 = vector.extract_strided_slice %11 {offsets = [0, 0], sizes = [8, 128], strides = [1, 1]} : vector<8x384xf32> to vector<8x128xf32>
    %13 = vector.extract_strided_slice %12 {offsets = [0, 0], sizes = [8, 32], strides = [1, 1]} : vector<8x128xf32> to vector<8x32xf32>
    %14 = vector.extract_strided_slice %12 {offsets = [0, 32], sizes = [8, 32], strides = [1, 1]} : vector<8x128xf32> to vector<8x32xf32>
    %15 = vector.extract_strided_slice %12 {offsets = [0, 64], sizes = [8, 32], strides = [1, 1]} : vector<8x128xf32> to vector<8x32xf32>
    %16 = vector.extract_strided_slice %12 {offsets = [0, 96], sizes = [8, 32], strides = [1, 1]} : vector<8x128xf32> to vector<8x32xf32>
    %17 = vector.shape_cast %13 : vector<8x32xf32> to vector<1x8x32xf32>
    %18 = vector.shape_cast %14 : vector<8x32xf32> to vector<1x8x32xf32>
    %19 = vector.shape_cast %15 : vector<8x32xf32> to vector<1x8x32xf32>
    %20 = vector.shape_cast %16 : vector<8x32xf32> to vector<1x8x32xf32>
    %21 = tpu.concatenate %17, %18, %19, %20 in 0 : vector<1x8x32xf32>, vector<1x8x32xf32>, vector<1x8x32xf32>, vector<1x8x32xf32> -> vector<4x8x32xf32>
    %22 = arith.truncf %21 : vector<4x8x32xf32> to vector<4x8x32xbf16>
    %23 = vector.extract_strided_slice %11 {offsets = [0, 128], sizes = [8, 128], strides = [1, 1]} : vector<8x384xf32> to vector<8x128xf32>
    %24 = vector.extract_strided_slice %23 {offsets = [0, 0], sizes = [8, 32], strides = [1, 1]} : vector<8x128xf32> to vector<8x32xf32>
    %25 = vector.extract_strided_slice %23 {offsets = [0, 32], sizes = [8, 32], strides = [1, 1]} : vector<8x128xf32> to vector<8x32xf32>
    %26 = vector.extract_strided_slice %23 {offsets = [0, 64], sizes = [8, 32], strides = [1, 1]} : vector<8x128xf32> to vector<8x32xf32>
    %27 = vector.extract_strided_slice %23 {offsets = [0, 96], sizes = [8, 32], strides = [1, 1]} : vector<8x128xf32> to vector<8x32xf32>
    %28 = vector.shape_cast %24 : vector<8x32xf32> to vector<1x8x32xf32>
    %29 = vector.shape_cast %25 : vector<8x32xf32> to vector<1x8x32xf32>
    %30 = vector.shape_cast %26 : vector<8x32xf32> to vector<1x8x32xf32>
    %31 = vector.shape_cast %27 : vector<8x32xf32> to vector<1x8x32xf32>
    %32 = tpu.concatenate %28, %29, %30, %31 in 0 : vector<1x8x32xf32>, vector<1x8x32xf32>, vector<1x8x32xf32>, vector<1x8x32xf32> -> vector<4x8x32xf32>
    %33 = arith.truncf %32 : vector<4x8x32xf32> to vector<4x8x32xbf16>
    %34 = vector.extract_strided_slice %11 {offsets = [0, 256], sizes = [8, 128], strides = [1, 1]} : vector<8x384xf32> to vector<8x128xf32>
    %35 = vector.extract_strided_slice %34 {offsets = [0, 0], sizes = [8, 32], strides = [1, 1]} : vector<8x128xf32> to vector<8x32xf32>
    %36 = vector.extract_strided_slice %34 {offsets = [0, 32], sizes = [8, 32], strides = [1, 1]} : vector<8x128xf32> to vector<8x32xf32>
    %37 = vector.extract_strided_slice %34 {offsets = [0, 64], sizes = [8, 32], strides = [1, 1]} : vector<8x128xf32> to vector<8x32xf32>
    %38 = vector.extract_strided_slice %34 {offsets = [0, 96], sizes = [8, 32], strides = [1, 1]} : vector<8x128xf32> to vector<8x32xf32>
    %39 = vector.shape_cast %35 : vector<8x32xf32> to vector<1x8x32xf32>
    %40 = vector.shape_cast %36 : vector<8x32xf32> to vector<1x8x32xf32>
    %41 = vector.shape_cast %37 : vector<8x32xf32> to vector<1x8x32xf32>
    %42 = vector.shape_cast %38 : vector<8x32xf32> to vector<1x8x32xf32>
    %43 = tpu.concatenate %39, %40, %41, %42 in 0 : vector<1x8x32xf32>, vector<1x8x32xf32>, vector<1x8x32xf32>, vector<1x8x32xf32> -> vector<4x8x32xf32>
    %44 = arith.truncf %43 : vector<4x8x32xf32> to vector<4x8x32xbf16>
    "tpu.trace_start"() <{level = 10 : i32, message = "hqd,hkd->hqk"}> : () -> ()
    %cst_8 = arith.constant dense<0.000000e+00> : vector<4x8x8xf32>
    %45 = tpu.matmul %22, %33, %cst_8 {dimension_numbers = #tpu.dot_dimension_numbers<[2], [2], [1], [1], [0, 0, 0, 1, 1, 1], [0], [0]>} : vector<4x8x32xbf16>, vector<4x8x32xbf16>, vector<4x8x8xf32> -> vector<4x8x8xf32>
    "tpu.trace_stop"() : () -> ()
    %cst_9 = arith.constant dense<0xFF800000> : vector<4x8xf32>
    %46 = vector.multi_reduction <maximumf>, %45, %cst_9 [2] : vector<4x8x8xf32> to vector<4x8xf32>
    %47 = vector.shape_cast %46 : vector<4x8xf32> to vector<4x8x1xf32>
    %48 = vector.broadcast %47 : vector<4x8x1xf32> to vector<4x8x8xf32>
    %49 = arith.subf %45, %48 : vector<4x8x8xf32>
    %50 = math.exp %49 : vector<4x8x8xf32>
    %cst_10 = arith.constant dense<0.000000e+00> : vector<4x8xf32>
    %51 = vector.multi_reduction <add>, %50, %cst_10 [2] : vector<4x8x8xf32> to vector<4x8xf32>
    %52 = vector.shape_cast %51 : vector<4x8xf32> to vector<4x8x1xf32>
    %53 = tpu.reciprocal %52 {approx = true} : vector<4x8x1xf32> -> vector<4x8x1xf32>
    %54 = vector.broadcast %53 : vector<4x8x1xf32> to vector<4x8x8xf32>
    %55 = arith.mulf %50, %54 : vector<4x8x8xf32>
    %56 = arith.truncf %55 : vector<4x8x8xf32> to vector<4x8x8xbf16>
    "tpu.trace_start"() <{level = 10 : i32, message = "hqk,hkd->hqd"}> : () -> ()
    %cst_11 = arith.constant dense<0.000000e+00> : vector<4x8x32xf32>
    %57 = tpu.matmul %56, %44, %cst_11 {dimension_numbers = #tpu.dot_dimension_numbers<[2], [1], [1], [2], [0, 0, 0, 1, 1, 2], [0], [0]>} : vector<4x8x8xbf16>, vector<4x8x32xbf16>, vector<4x8x32xf32> -> vector<4x8x32xf32>
    "tpu.trace_stop"() : () -> ()
    %58 = arith.truncf %57 : vector<4x8x32xf32> to vector<4x8x32xbf16>
    %c0_12 = arith.constant 0 : index
    %c0_13 = arith.constant 0 : index
    %c0_14 = arith.constant 0 : index
    %c0_15 = arith.constant 0 : index
    %59 = vector.load %arg7[%c0_12, %c0_13, %c0_14, %c0_15] : memref<1x4x32x128xbf16, #tpu.memory_space<vmem>>, vector<1x4x32x128xbf16>
    %60 = vector.shape_cast %59 : vector<1x4x32x128xbf16> to vector<4x32x128xbf16>
    "tpu.trace_start"() <{level = 10 : i32, message = "hqd,hdm->hqm"}> : () -> ()
    %cst_16 = arith.constant dense<0.000000e+00> : vector<4x8x128xf32>
    %61 = tpu.matmul %58, %60, %cst_16 {dimension_numbers = #tpu.dot_dimension_numbers<[2], [1], [1], [2], [0, 0, 0, 1, 1, 2], [0], [0]>} : vector<4x8x32xbf16>, vector<4x32x128xbf16>, vector<4x8x128xf32> -> vector<4x8x128xf32>
    "tpu.trace_stop"() : () -> ()
    %cst_17 = arith.constant dense<0.000000e+00> : vector<8x128xf32>
    %62 = vector.multi_reduction <add>, %61, %cst_17 [0] : vector<4x8x128xf32> to vector<8x128xf32>
    %c0_18 = arith.constant 0 : index
    %c0_19 = arith.constant 0 : index
    %c0_20 = arith.constant 0 : index
    %63 = vector.load %arg8[%c0_18, %c0_19, %c0_20] : memref<1x1x128xf32, #tpu.memory_space<vmem>>, vector<1x1x128xf32>
    %64 = vector.shape_cast %63 : vector<1x1x128xf32> to vector<1x128xf32>
    %65 = vector.broadcast %64 : vector<1x128xf32> to vector<8x128xf32>
    %66 = arith.addf %62, %65 : vector<8x128xf32>
    %67 = arith.addf %66, %3 : vector<8x128xf32>
    %c0_21 = arith.constant 0 : index
    %c0_22 = arith.constant 0 : index
    %c0_23 = arith.constant 0 : index
    %68 = vector.load %arg9[%c0_21, %c0_22, %c0_23] : memref<1x1x128xf32, #tpu.memory_space<vmem>>, vector<1x1x128xf32>
    %69 = vector.shape_cast %68 : vector<1x1x128xf32> to vector<1x128xf32>
    %c0_24 = arith.constant 0 : index
    %c0_25 = arith.constant 0 : index
    %c0_26 = arith.constant 0 : index
    %70 = vector.load %arg10[%c0_24, %c0_25, %c0_26] : memref<1x1x128xf32, #tpu.memory_space<vmem>>, vector<1x1x128xf32>
    %71 = vector.shape_cast %70 : vector<1x1x128xf32> to vector<1x128xf32>
    %cst_27 = arith.constant dense<0.000000e+00> : vector<8xf32>
    %72 = vector.multi_reduction <add>, %67, %cst_27 [1] : vector<8x128xf32> to vector<8xf32>
    %73 = vector.shape_cast %72 : vector<8xf32> to vector<8x1xf32>
    %cst_28 = arith.constant 1.280000e+02 : f32
    %74 = vector.broadcast %cst_28 : f32 to vector<8x1xf32>
    %75 = arith.divf %73, %74 : vector<8x1xf32>
    %76 = vector.broadcast %75 : vector<8x1xf32> to vector<8x128xf32>
    %77 = arith.subf %67, %76 : vector<8x128xf32>
    %78 = arith.mulf %77, %77 : vector<8x128xf32>
    %cst_29 = arith.constant dense<0.000000e+00> : vector<8xf32>
    %79 = vector.multi_reduction <add>, %78, %cst_29 [1] : vector<8x128xf32> to vector<8xf32>
    %80 = vector.shape_cast %79 : vector<8xf32> to vector<8x1xf32>
    %cst_30 = arith.constant 1.280000e+02 : f32
    %81 = vector.broadcast %cst_30 : f32 to vector<8x1xf32>
    %82 = arith.divf %80, %81 : vector<8x1xf32>
    %cst_31 = arith.constant 9.99999996E-13 : f32
    %83 = vector.broadcast %cst_31 : f32 to vector<8x1xf32>
    %84 = arith.addf %82, %83 : vector<8x1xf32>
    %85 = math.rsqrt %84 : vector<8x1xf32>
    %86 = vector.broadcast %85 : vector<8x1xf32> to vector<8x128xf32>
    %87 = arith.mulf %77, %86 : vector<8x128xf32>
    %88 = vector.broadcast %69 : vector<1x128xf32> to vector<8x128xf32>
    %89 = arith.mulf %87, %88 : vector<8x128xf32>
    %90 = vector.broadcast %71 : vector<1x128xf32> to vector<8x128xf32>
    %91 = arith.addf %89, %90 : vector<8x128xf32>
    %92 = arith.truncf %91 : vector<8x128xf32> to vector<8x128xbf16>
    %c0_32 = arith.constant 0 : index
    %c0_33 = arith.constant 0 : index
    %c0_34 = arith.constant 0 : index
    %93 = vector.load %arg11[%c0_32, %c0_33, %c0_34] : memref<1x128x512xbf16, #tpu.memory_space<vmem>>, vector<1x128x512xbf16>
    %94 = vector.shape_cast %93 : vector<1x128x512xbf16> to vector<128x512xbf16>
    %cst_35 = arith.constant dense<0.000000e+00> : vector<8x512xf32>
    %95 = tpu.matmul %92, %94, %cst_35 {dimension_numbers = #tpu.dot_dimension_numbers<[1], [0], [0], [1], [0, 0, 1, 1], [], []>} : vector<8x128xbf16>, vector<128x512xbf16>, vector<8x512xf32> -> vector<8x512xf32>
    %c0_36 = arith.constant 0 : index
    %c0_37 = arith.constant 0 : index
    %c0_38 = arith.constant 0 : index
    %96 = vector.load %arg12[%c0_36, %c0_37, %c0_38] : memref<1x1x512xf32, #tpu.memory_space<vmem>>, vector<1x1x512xf32>
    %97 = vector.shape_cast %96 : vector<1x1x512xf32> to vector<1x512xf32>
    %98 = vector.broadcast %97 : vector<1x512xf32> to vector<8x512xf32>
    %99 = arith.addf %95, %98 : vector<8x512xf32>
    %cst_39 = arith.constant 5.000000e-01 : f32
    %100 = vector.broadcast %cst_39 : f32 to vector<8x512xf32>
    %101 = arith.mulf %100, %99 : vector<8x512xf32>
    %cst_40 = arith.constant 0.707106769 : f32
    %102 = vector.broadcast %cst_40 : f32 to vector<8x512xf32>
    %103 = arith.mulf %99, %102 : vector<8x512xf32>
    %104 = math.absf %103 : vector<8x512xf32>
    %cst_41 = arith.constant 0.327591091 : f32
    %105 = vector.broadcast %cst_41 : f32 to vector<8x512xf32>
    %106 = arith.mulf %105, %104 : vector<8x512xf32>
    %cst_42 = arith.constant 1.000000e+00 : f32
    %107 = vector.broadcast %cst_42 : f32 to vector<8x512xf32>
    %108 = arith.addf %107, %106 : vector<8x512xf32>
    %cst_43 = arith.constant 1.000000e+00 : f32
    %109 = vector.broadcast %cst_43 : f32 to vector<8x512xf32>
    %110 = arith.divf %109, %108 : vector<8x512xf32>
    %cst_44 = arith.constant 1.06140542 : f32
    %111 = vector.broadcast %cst_44 : f32 to vector<8x512xf32>
    %112 = arith.mulf %111, %110 : vector<8x512xf32>
    %cst_45 = arith.constant -1.45315206 : f32
    %113 = vector.broadcast %cst_45 : f32 to vector<8x512xf32>
    %114 = arith.addf %112, %113 : vector<8x512xf32>
    %115 = arith.mulf %114, %110 : vector<8x512xf32>
    %cst_46 = arith.constant 1.42141378 : f32
    %116 = vector.broadcast %cst_46 : f32 to vector<8x512xf32>
    %117 = arith.addf %115, %116 : vector<8x512xf32>
    %118 = arith.mulf %117, %110 : vector<8x512xf32>
    %cst_47 = arith.constant -0.284496725 : f32
    %119 = vector.broadcast %cst_47 : f32 to vector<8x512xf32>
    %120 = arith.addf %118, %119 : vector<8x512xf32>
    %121 = arith.mulf %120, %110 : vector<8x512xf32>
    %cst_48 = arith.constant 0.254829586 : f32
    %122 = vector.broadcast %cst_48 : f32 to vector<8x512xf32>
    %123 = arith.addf %121, %122 : vector<8x512xf32>
    %124 = arith.mulf %123, %110 : vector<8x512xf32>
    %cst_49 = arith.constant 0.000000e+00 : f32
    %125 = vector.broadcast %cst_49 : f32 to vector<8x512xf32>
    %126 = arith.subf %125, %104 : vector<8x512xf32>
    %127 = arith.mulf %126, %104 : vector<8x512xf32>
    %128 = math.exp %127 : vector<8x512xf32>
    %129 = arith.mulf %124, %128 : vector<8x512xf32>
    %cst_50 = arith.constant 1.000000e+00 : f32
    %130 = vector.broadcast %cst_50 : f32 to vector<8x512xf32>
    %131 = arith.subf %130, %129 : vector<8x512xf32>
    %cst_51 = arith.constant 0.000000e+00 : f32
    %132 = vector.broadcast %cst_51 : f32 to vector<8x512xf32>
    %133 = arith.cmpf olt, %103, %132 : vector<8x512xf32>
    %cst_52 = arith.constant 0.000000e+00 : f32
    %134 = vector.broadcast %cst_52 : f32 to vector<8x512xf32>
    %135 = arith.subf %134, %131 : vector<8x512xf32>
    %136 = arith.select %133, %135, %131 : vector<8x512xi1>, vector<8x512xf32>
    %cst_53 = arith.constant 1.000000e+00 : f32
    %137 = vector.broadcast %cst_53 : f32 to vector<8x512xf32>
    %138 = arith.addf %137, %136 : vector<8x512xf32>
    %139 = arith.mulf %101, %138 : vector<8x512xf32>
    %140 = arith.truncf %139 : vector<8x512xf32> to vector<8x512xbf16>
    %c0_54 = arith.constant 0 : index
    %c0_55 = arith.constant 0 : index
    %c0_56 = arith.constant 0 : index
    %141 = vector.load %arg13[%c0_54, %c0_55, %c0_56] : memref<1x512x128xbf16, #tpu.memory_space<vmem>>, vector<1x512x128xbf16>
    %142 = vector.shape_cast %141 : vector<1x512x128xbf16> to vector<512x128xbf16>
    %cst_57 = arith.constant dense<0.000000e+00> : vector<8x128xf32>
    %143 = tpu.matmul %140, %142, %cst_57 {dimension_numbers = #tpu.dot_dimension_numbers<[1], [0], [0], [1], [0, 0, 1, 1], [], []>} : vector<8x512xbf16>, vector<512x128xbf16>, vector<8x128xf32> -> vector<8x128xf32>
    %c0_58 = arith.constant 0 : index
    %c0_59 = arith.constant 0 : index
    %c0_60 = arith.constant 0 : index
    %144 = vector.load %arg14[%c0_58, %c0_59, %c0_60] : memref<1x1x128xf32, #tpu.memory_space<vmem>>, vector<1x1x128xf32>
    %145 = vector.shape_cast %144 : vector<1x1x128xf32> to vector<1x128xf32>
    %146 = vector.broadcast %145 : vector<1x128xf32> to vector<8x128xf32>
    %147 = arith.addf %143, %146 : vector<8x128xf32>
    %148 = arith.addf %147, %91 : vector<8x128xf32>
    %c0_61 = arith.constant 0 : index
    %c0_62 = arith.constant 0 : index
    %c0_63 = arith.constant 0 : index
    %149 = vector.load %arg15[%c0_61, %c0_62, %c0_63] : memref<1x1x128xf32, #tpu.memory_space<vmem>>, vector<1x1x128xf32>
    %150 = vector.shape_cast %149 : vector<1x1x128xf32> to vector<1x128xf32>
    %c0_64 = arith.constant 0 : index
    %c0_65 = arith.constant 0 : index
    %c0_66 = arith.constant 0 : index
    %151 = vector.load %arg16[%c0_64, %c0_65, %c0_66] : memref<1x1x128xf32, #tpu.memory_space<vmem>>, vector<1x1x128xf32>
    %152 = vector.shape_cast %151 : vector<1x1x128xf32> to vector<1x128xf32>
    %cst_67 = arith.constant dense<0.000000e+00> : vector<8xf32>
    %153 = vector.multi_reduction <add>, %148, %cst_67 [1] : vector<8x128xf32> to vector<8xf32>
    %154 = vector.shape_cast %153 : vector<8xf32> to vector<8x1xf32>
    %cst_68 = arith.constant 1.280000e+02 : f32
    %155 = vector.broadcast %cst_68 : f32 to vector<8x1xf32>
    %156 = arith.divf %154, %155 : vector<8x1xf32>
    %157 = vector.broadcast %156 : vector<8x1xf32> to vector<8x128xf32>
    %158 = arith.subf %148, %157 : vector<8x128xf32>
    %159 = arith.mulf %158, %158 : vector<8x128xf32>
    %cst_69 = arith.constant dense<0.000000e+00> : vector<8xf32>
    %160 = vector.multi_reduction <add>, %159, %cst_69 [1] : vector<8x128xf32> to vector<8xf32>
    %161 = vector.shape_cast %160 : vector<8xf32> to vector<8x1xf32>
    %cst_70 = arith.constant 1.280000e+02 : f32
    %162 = vector.broadcast %cst_70 : f32 to vector<8x1xf32>
    %163 = arith.divf %161, %162 : vector<8x1xf32>
    %cst_71 = arith.constant 9.99999996E-13 : f32
    %164 = vector.broadcast %cst_71 : f32 to vector<8x1xf32>
    %165 = arith.addf %163, %164 : vector<8x1xf32>
    %166 = math.rsqrt %165 : vector<8x1xf32>
    %167 = vector.broadcast %166 : vector<8x1xf32> to vector<8x128xf32>
    %168 = arith.mulf %158, %167 : vector<8x128xf32>
    %169 = vector.broadcast %150 : vector<1x128xf32> to vector<8x128xf32>
    %170 = arith.mulf %168, %169 : vector<8x128xf32>
    %171 = vector.broadcast %152 : vector<1x128xf32> to vector<8x128xf32>
    %172 = arith.addf %170, %171 : vector<8x128xf32>
    %c0_72 = arith.constant 0 : index
    %c0_73 = arith.constant 0 : index
    %173 = vector.load %arg21[%c0_72, %c0_73] : memref<8x128xf32, #tpu.memory_space<vmem>>, vector<8x128xf32>
    tpu.vector_store %arg21[%c0_72, %c0_73], %172 {strides = array<i32>} : memref<8x128xf32, #tpu.memory_space<vmem>>, vector<8x128xf32>,
    %c1_i32 = arith.constant 1 : i32
    %174 = arith.cmpi eq, %arg1, %c1_i32 : i32
    %175 = arith.extui %174 : i1 to i32
    %c0_i32_74 = arith.constant 0 : i32
    %176 = arith.cmpi ne, %175, %c0_i32_74 : i32
    scf.if %176 {
      %cst_75 = arith.constant dense<0.000000e+00> : vector<128xf32>
      %177 = vector.multi_reduction <add>, %172, %cst_75 [0] : vector<8x128xf32> to vector<128xf32>
      %178 = vector.shape_cast %177 : vector<128xf32> to vector<1x128xf32>
      %cst_76 = arith.constant 8.000000e+00 : f32
      %179 = vector.broadcast %cst_76 : f32 to vector<1x128xf32>
      %180 = arith.divf %178, %179 : vector<1x128xf32>
      %c0_77 = arith.constant 0 : index
      %c0_78 = arith.constant 0 : index
      %c0_79 = arith.constant 0 : index
      %181 = vector.load %arg19[%c0_77, %c0_78, %c0_79] : memref<1x1x128xf32, #tpu.memory_space<vmem>>, vector<1x1x128xf32>
      %182 = vector.shape_cast %181 : vector<1x1x128xf32> to vector<1x128xf32>
      %183 = vector.shape_cast %180 : vector<1x128xf32> to vector<1x1x128xf32>
      tpu.vector_store %arg19[%c0_77, %c0_78, %c0_79], %183 {strides = array<i32>} : memref<1x1x128xf32, #tpu.memory_space<vmem>>, vector<1x1x128xf32>,
      %184 = arith.truncf %180 : vector<1x128xf32> to vector<1x128xbf16>
      %c0_80 = arith.constant 0 : index
      %c0_81 = arith.constant 0 : index
      %185 = vector.load %arg17[%c0_80, %c0_81] : memref<128x128xbf16, #tpu.memory_space<vmem>>, vector<128x128xbf16>
      %cst_82 = arith.constant dense<0.000000e+00> : vector<1x128xf32>
      %186 = tpu.matmul %184, %185, %cst_82 {dimension_numbers = #tpu.dot_dimension_numbers<[1], [0], [0], [1], [0, 0, 1, 1], [], []>} : vector<1x128xbf16>, vector<128x128xbf16>, vector<1x128xf32> -> vector<1x128xf32>
      %c0_83 = arith.constant 0 : index
      %c0_84 = arith.constant 0 : index
      %187 = vector.load %arg18[%c0_83, %c0_84] : memref<1x128xf32, #tpu.memory_space<vmem>>, vector<1x128xf32>
      %188 = arith.addf %186, %187 : vector<1x128xf32>
      %cst_85 = arith.constant 5.000000e-01 : f32
      %189 = vector.broadcast %cst_85 : f32 to vector<1x128xf32>
      %190 = arith.mulf %189, %188 : vector<1x128xf32>
      %cst_86 = arith.constant 0.707106769 : f32
      %191 = vector.broadcast %cst_86 : f32 to vector<1x128xf32>
      %192 = arith.mulf %188, %191 : vector<1x128xf32>
      %193 = math.absf %192 : vector<1x128xf32>
      %cst_87 = arith.constant 0.327591091 : f32
      %194 = vector.broadcast %cst_87 : f32 to vector<1x128xf32>
      %195 = arith.mulf %194, %193 : vector<1x128xf32>
      %cst_88 = arith.constant 1.000000e+00 : f32
      %196 = vector.broadcast %cst_88 : f32 to vector<1x128xf32>
      %197 = arith.addf %196, %195 : vector<1x128xf32>
      %cst_89 = arith.constant 1.000000e+00 : f32
      %198 = vector.broadcast %cst_89 : f32 to vector<1x128xf32>
      %199 = arith.divf %198, %197 : vector<1x128xf32>
      %cst_90 = arith.constant 1.06140542 : f32
      %200 = vector.broadcast %cst_90 : f32 to vector<1x128xf32>
      %201 = arith.mulf %200, %199 : vector<1x128xf32>
      %cst_91 = arith.constant -1.45315206 : f32
      %202 = vector.broadcast %cst_91 : f32 to vector<1x128xf32>
      %203 = arith.addf %201, %202 : vector<1x128xf32>
      %204 = arith.mulf %203, %199 : vector<1x128xf32>
      %cst_92 = arith.constant 1.42141378 : f32
      %205 = vector.broadcast %cst_92 : f32 to vector<1x128xf32>
      %206 = arith.addf %204, %205 : vector<1x128xf32>
      %207 = arith.mulf %206, %199 : vector<1x128xf32>
      %cst_93 = arith.constant -0.284496725 : f32
      %208 = vector.broadcast %cst_93 : f32 to vector<1x128xf32>
      %209 = arith.addf %207, %208 : vector<1x128xf32>
      %210 = arith.mulf %209, %199 : vector<1x128xf32>
      %cst_94 = arith.constant 0.254829586 : f32
      %211 = vector.broadcast %cst_94 : f32 to vector<1x128xf32>
      %212 = arith.addf %210, %211 : vector<1x128xf32>
      %213 = arith.mulf %212, %199 : vector<1x128xf32>
      %cst_95 = arith.constant 0.000000e+00 : f32
      %214 = vector.broadcast %cst_95 : f32 to vector<1x128xf32>
      %215 = arith.subf %214, %193 : vector<1x128xf32>
      %216 = arith.mulf %215, %193 : vector<1x128xf32>
      %217 = math.exp %216 : vector<1x128xf32>
      %218 = arith.mulf %213, %217 : vector<1x128xf32>
      %cst_96 = arith.constant 1.000000e+00 : f32
      %219 = vector.broadcast %cst_96 : f32 to vector<1x128xf32>
      %220 = arith.subf %219, %218 : vector<1x128xf32>
      %cst_97 = arith.constant 0.000000e+00 : f32
      %221 = vector.broadcast %cst_97 : f32 to vector<1x128xf32>
      %222 = arith.cmpf olt, %192, %221 : vector<1x128xf32>
      %cst_98 = arith.constant 0.000000e+00 : f32
      %223 = vector.broadcast %cst_98 : f32 to vector<1x128xf32>
      %224 = arith.subf %223, %220 : vector<1x128xf32>
      %225 = arith.select %222, %224, %220 : vector<1x128xi1>, vector<1x128xf32>
      %cst_99 = arith.constant 1.000000e+00 : f32
      %226 = vector.broadcast %cst_99 : f32 to vector<1x128xf32>
      %227 = arith.addf %226, %225 : vector<1x128xf32>
      %228 = arith.mulf %190, %227 : vector<1x128xf32>
      %c0_100 = arith.constant 0 : index
      %c0_101 = arith.constant 0 : index
      %c0_102 = arith.constant 0 : index
      %229 = vector.load %arg20[%c0_100, %c0_101, %c0_102] : memref<1x1x128xf32, #tpu.memory_space<vmem>>, vector<1x1x128xf32>
      %230 = vector.shape_cast %229 : vector<1x1x128xf32> to vector<1x128xf32>
      %231 = vector.shape_cast %228 : vector<1x128xf32> to vector<1x1x128xf32>
      tpu.vector_store %arg20[%c0_100, %c0_101, %c0_102], %231 {strides = array<i32>} : memref<1x1x128xf32, #tpu.memory_space<vmem>>, vector<1x1x128xf32>,
    } else {
    }
    return
  }
  func.func @transform_0(%arg0: i32, %arg1: i32) -> (i32, i32, i32) {
    %c0_i32 = arith.constant 0 : i32
    %c0_i32_0 = arith.constant 0 : i32
    %c0_i32_1 = arith.constant 0 : i32
    return %arg0, %c0_i32, %c0_i32_0 : i32, i32, i32
  }
  func.func @transform_1(%arg0: i32, %arg1: i32) -> (i32, i32) {
    %c0_i32 = arith.constant 0 : i32
    %c0_i32_0 = arith.constant 0 : i32
    %c0_i32_1 = arith.constant 0 : i32
    return %c0_i32, %c0_i32_0 : i32, i32
  }
  func.func @transform_2(%arg0: i32, %arg1: i32) -> (i32, i32) {
    %c0_i32 = arith.constant 0 : i32
    %c0_i32_0 = arith.constant 0 : i32
    %c0_i32_1 = arith.constant 0 : i32
    return %c0_i32, %c0_i32_0 : i32, i32
  }
  func.func @transform_3(%arg0: i32, %arg1: i32) -> (i32, i32, i32) {
    %c0_i32 = arith.constant 0 : i32
    %c0_i32_0 = arith.constant 0 : i32
    %c0_i32_1 = arith.constant 0 : i32
    return %arg1, %c0_i32, %c0_i32_0 : i32, i32, i32
  }
  func.func @transform_4(%arg0: i32, %arg1: i32) -> (i32, i32, i32) {
    %c0_i32 = arith.constant 0 : i32
    %c0_i32_0 = arith.constant 0 : i32
    %c0_i32_1 = arith.constant 0 : i32
    return %arg1, %c0_i32, %c0_i32_0 : i32, i32, i32
  }
  func.func @transform_5(%arg0: i32, %arg1: i32) -> (i32, i32, i32, i32) {
    %c0_i32 = arith.constant 0 : i32
    %c0_i32_0 = arith.constant 0 : i32
    %c0_i32_1 = arith.constant 0 : i32
    %c0_i32_2 = arith.constant 0 : i32
    return %arg1, %c0_i32, %c0_i32_0, %c0_i32_1 : i32, i32, i32, i32
  }
  func.func @transform_6(%arg0: i32, %arg1: i32) -> (i32, i32, i32) {
    %c0_i32 = arith.constant 0 : i32
    %c0_i32_0 = arith.constant 0 : i32
    %c0_i32_1 = arith.constant 0 : i32
    return %arg1, %c0_i32, %c0_i32_0 : i32, i32, i32
  }
  func.func @transform_7(%arg0: i32, %arg1: i32) -> (i32, i32, i32) {
    %c0_i32 = arith.constant 0 : i32
    %c0_i32_0 = arith.constant 0 : i32
    %c0_i32_1 = arith.constant 0 : i32
    return %arg1, %c0_i32, %c0_i32_0 : i32, i32, i32
  }
  func.func @transform_8(%arg0: i32, %arg1: i32) -> (i32, i32, i32) {
    %c0_i32 = arith.constant 0 : i32
    %c0_i32_0 = arith.constant 0 : i32
    %c0_i32_1 = arith.constant 0 : i32
    return %arg1, %c0_i32, %c0_i32_0 : i32, i32, i32
  }
  func.func @transform_9(%arg0: i32, %arg1: i32) -> (i32, i32, i32) {
    %c0_i32 = arith.constant 0 : i32
    %c0_i32_0 = arith.constant 0 : i32
    %c0_i32_1 = arith.constant 0 : i32
    return %arg1, %c0_i32, %c0_i32_0 : i32, i32, i32
  }
  func.func @transform_10(%arg0: i32, %arg1: i32) -> (i32, i32, i32) {
    %c0_i32 = arith.constant 0 : i32
    %c0_i32_0 = arith.constant 0 : i32
    %c0_i32_1 = arith.constant 0 : i32
    return %arg1, %c0_i32, %c0_i32_0 : i32, i32, i32
  }
  func.func @transform_11(%arg0: i32, %arg1: i32) -> (i32, i32, i32) {
    %c0_i32 = arith.constant 0 : i32
    %c0_i32_0 = arith.constant 0 : i32
    %c0_i32_1 = arith.constant 0 : i32
    return %arg1, %c0_i32, %c0_i32_0 : i32, i32, i32
  }
  func.func @transform_12(%arg0: i32, %arg1: i32) -> (i32, i32, i32) {
    %c0_i32 = arith.constant 0 : i32
    %c0_i32_0 = arith.constant 0 : i32
    %c0_i32_1 = arith.constant 0 : i32
    return %arg1, %c0_i32, %c0_i32_0 : i32, i32, i32
  }
  func.func @transform_13(%arg0: i32, %arg1: i32) -> (i32, i32, i32) {
    %c0_i32 = arith.constant 0 : i32
    %c0_i32_0 = arith.constant 0 : i32
    %c0_i32_1 = arith.constant 0 : i32
    return %arg1, %c0_i32, %c0_i32_0 : i32, i32, i32
  }
  func.func @transform_14(%arg0: i32, %arg1: i32) -> (i32, i32, i32) {
    %c0_i32 = arith.constant 0 : i32
    %c0_i32_0 = arith.constant 0 : i32
    %c0_i32_1 = arith.constant 0 : i32
    return %arg1, %c0_i32, %c0_i32_0 : i32, i32, i32
  }
  func.func @transform_15(%arg0: i32, %arg1: i32) -> (i32, i32) {
    %c0_i32 = arith.constant 0 : i32
    %c0_i32_0 = arith.constant 0 : i32
    %c0_i32_1 = arith.constant 0 : i32
    return %c0_i32, %c0_i32_0 : i32, i32
  }
  func.func @transform_16(%arg0: i32, %arg1: i32) -> (i32, i32) {
    %c0_i32 = arith.constant 0 : i32
    %c0_i32_0 = arith.constant 0 : i32
    %c0_i32_1 = arith.constant 0 : i32
    return %c0_i32, %c0_i32_0 : i32, i32
  }
  func.func @transform_17(%arg0: i32, %arg1: i32) -> (i32, i32, i32) {
    %c0_i32 = arith.constant 0 : i32
    %c0_i32_0 = arith.constant 0 : i32
    %c0_i32_1 = arith.constant 0 : i32
    return %arg0, %c0_i32, %c0_i32_0 : i32, i32, i32
  }
  func.func @transform_18(%arg0: i32, %arg1: i32) -> (i32, i32, i32) {
    %c0_i32 = arith.constant 0 : i32
    %c0_i32_0 = arith.constant 0 : i32
    %c0_i32_1 = arith.constant 0 : i32
    return %arg0, %c0_i32, %c0_i32_0 : i32, i32, i32
  }
}

</mosaic_0001>

<bundles_post_ra>
// kernel: impala_transformer_forward.1
= control target key start
LH: loop header
LB: loop body
LE: loop exit
PB: predicated region body
PF: predicated region fallthrough
CT: control target
= control target key end

     0   :  { %s4764_s0 = inlined_call_operand.vmem [shape: f32[2,8,128], index: 0, kind: input, shape index: {}]   ;;  %s4765_s1 = inlined_call_operand.vmem [shape: f32[1,128], index: 1, kind: input, shape index: {}]   ;;  %s4766_s2 = inlined_call_operand.vmem [shape: f32[1,128], index: 2, kind: input, shape index: {}]   ;;  %s4767_s3 = inlined_call_operand.hbm [shape: bf16[2,128,384], index: 3, kind: input, shape index: {}]   ;;  %s4768_s4 = inlined_call_operand.vmem [shape: f32[2,1,384], index: 4, kind: input, shape index: {}]   ;;  %s4769_s5 = inlined_call_operand.vmem [shape: bf16[2,4,32,128], index: 5, kind: input, shape index: {}]   ;;  %s4770_s6 = inlined_call_operand.vmem [shape: f32[2,1,128], index: 6, kind: input, shape index: {}]   ;;  %s4771_s7 = inlined_call_operand.vmem [shape: f32[2,1,128], index: 7, kind: input, shape index: {}]   ;;  %s4772_s8 = inlined_call_operand.vmem [shape: f32[2,1,128], index: 8, kind: input, shape index: {}]   ;;  %s4773_s9 = inlined_call_operand.hbm [shape: bf16[2,128,512], index: 9, kind: input, shape index: {}]   ;;  %s4774_s10 = inlined_call_operand.vmem [shape: f32[2,1,512], index: 10, kind: input, shape index: {}]   ;;  %s4775_s11 = inlined_call_operand.hbm [shape: bf16[2,512,128], index: 11, kind: input, shape index: {}]   ;;  %s4776_s12 = inlined_call_operand.vmem [shape: f32[2,1,128], index: 12, kind: input, shape index: {}]   ;;  %s4777_s13 = inlined_call_operand.vmem [shape: f32[2,1,128], index: 13, kind: input, shape index: {}]   ;;  %s4778_s14 = inlined_call_operand.vmem [shape: f32[2,1,128], index: 14, kind: input, shape index: {}]   ;;  %s4779_s15 = inlined_call_operand.vmem [shape: bf16[128,128], index: 15, kind: input, shape index: {}]   ;;  %s4780_s16 = inlined_call_operand.vmem [shape: f32[1,128], index: 16, kind: input, shape index: {}]   ;;  %s4781_s17 = inlined_call_operand.hbm [shape: f32[2,1,128], index: 17, kind: output, shape index: {0}]   ;;  %s4782_s18 = inlined_call_operand.vmem [shape: f32[2,1,128], index: 18, kind: output, shape index: {1}]  }
   0x1   :  { %4804 = sst [smem:[#allocation28_spill]] %s4764_s0 }
   0x2   :  { %4805 = sst [smem:[#allocation29_spill]] %s4765_s1 }
   0x3   :  { %4806 = sst [smem:[#allocation30_spill]] %s4766_s2 }
   0x4   :  { %4807 = sst [smem:[#allocation31_spill]] %s4767_s3 }
   0x5   :  { %4808 = sst [smem:[#allocation32_spill]] %s4768_s4 }
   0x6   :  { %4809 = sst [smem:[#allocation33_spill]] %s4769_s5 }
   0x7   :  { %4810 = sst [smem:[#allocation34_spill]] %s4771_s7 }
   0x8   :  { %4811 = sst [smem:[#allocation35_spill]] %s4772_s8 }
   0x9   :  { %4812 = sst [smem:[#allocation36_spill]] %s4773_s9 }
   0xa   :  { %4813 = sst [smem:[#allocation37_spill]] %s4774_s10 }
   0xb   :  { %4814 = sst [smem:[#allocation38_spill]] %s4775_s11 }
   0xc   :  { %4815 = sst [smem:[#allocation39_spill]] %s4776_s12 }
   0xd   :  { %4816 = sst [smem:[#allocation40_spill]] %s4777_s13 }
   0xe   :  { %4817 = sst [smem:[#allocation41_spill]] %s4778_s14 }
   0xf   :  { %4818 = sst [smem:[#allocation42_spill]] %s4779_s15 }
  0x10   :  { %4819 = sst [smem:[#allocation43_spill]] %s4780_s16 }
  0x11   :  { %4820 = sst [smem:[#allocation44_spill]] %s4781_s17 }
  0x12   :  { %4821 = sst [smem:[#allocation45_spill]] %s4782_s18 }
  0x13   :  { %24 = vsyncpa [#allocation4], 0 }
  0x14   :  { %26 = vsyncpa [#allocation4 + $0x1], 0 }
  0x15   :  { %27 = vsyncpa [#allocation7], 0 }
  0x16   :  { %29 = vsyncpa [#allocation7 + $0x1], 0 }
  0x17   :  { %30 = vsyncpa [#allocation5], 0 }
  0x18   :  { %32 = vsyncpa [#allocation5 + $0x1], 0  ;;  %s4061_s27 = smov 0   ;;  %s4063_s28 = smov 0  }
  0x19   :  { %s4065_s29 = smov 0   ;;  %s4067_s30 = smov 0  }
  0x1a   :  { %s4069_s0 = smov 0   ;;  %s4071_s19 = smov 0  }
  0x1b   :  { %s4073_s1 = smov 0   ;;  %s4075_s20 = smov 0  }
  0x1c   :  { %s4077_s21 = smov 0   ;;  %s4079_s22 = smov 0  }
  0x1d   :  { %s4081_s2 = smov 0  }
  0x1e LB: > { %4822 = sst [smem:[#allocation13_spill]] %s3906_s27  ;;  %s4115_s23 = sadd.s32 4294967295, %s3946_s2   ;;  %s3946_s2 = sphi %s4081_s2, %s38_s2   ;;  %s3942_s22 = sphi %s4079_s22, %s4893_s22   ;;  %s3938_s21 = sphi %s4077_s21, %s4892_s21   ;;  %s3934_s20 = sphi %s4075_s20, %s4891_s20   ;;  %s3930_s1 = sphi %s4073_s1, %s4890_s1   ;;  %s3926_s19 = sphi %s4071_s19, %s4889_s19   ;;  %s3922_s0 = sphi %s4069_s0, %s4888_s0   ;;  %s3918_s30 = sphi %s4067_s30, %s4887_s30   ;;  %s3914_s29 = sphi %s4065_s29, %s4886_s29   ;;  %s3910_s28 = sphi %s4063_s28, %s4895_s28   ;;  %s3906_s27 = sphi %s4061_s27, %s4894_s27  }
  0x1f   : > { %4823 = sst [smem:[#allocation14_spill]] %s3914_s29  ;;  %s3071_s24 = sadd.s32 4294967294, %s3946_s2  }
  0x20   : > { %4824 = sst [smem:[#allocation15_spill]] %s3922_s0  ;;  %s47_s25 = sadd.s32 1, %s3938_s21 }
  0x21   : > { %4825 = sst [smem:[#allocation16_spill]] %s3926_s19  ;;  %s50_s26 = sadd.s32 1, %s3942_s22 }
  0x22   : > { %4826 = sst [smem:[#allocation17_spill]] %s3934_s20  ;;  %p48_p0 = scmp.ge.s32.totalorder %s47_s25, 2 }
  0x23   : > { %4827 = sst [smem:[#allocation18_spill]] %s3938_s21  ;;  %s125_s17 = sadd.s32 1, %s3926_s19 }
  0x24   : > { %4828 = sst [smem:[#allocation19_spill]] %s3942_s22  ;;  %p132_p1 = scmp.ne.s32.totalorder %s3926_s19, %s3922_s0 }
  0x25   : > { %4829 = sst [smem:[#allocation20_spill]] %s3946_s2  ;;  %p133_p2 = scmp.eq.s32.totalorder %s3946_s2, 0 }
  0x26   : > { %s4897_s25 = smov (%p48_p0, %s47_s25), 0  ;;  %s4899_s26 = smov (!%p48_p0, %s50_s26), %s3942_s22 }
  0x27   : > { %4830 = sst [smem:[#allocation21_spill]] %s4897_s25  ;;  %s122_s16 = ssub.s32 %s3938_s21, %s4897_s25 }
  0x28   : > { %p4129_p3 = por %p133_p2, %p132_p1  ;;  %p52_p4 = scmp.ge.s32.totalorder %s4899_s26, 2 }
  0x29   : > { %p123_p5 = scmp.eq.s32.totalorder %s122_s16, 0  ;;  %p138_p6 = scmp.ne.s32.totalorder %s3922_s0, %s3918_s30 }
  0x2a   : > { %p139_p7 = scmp.eq.s32.totalorder %s4115_s23, 0  ;;  %s4901_s26 = smov (%p52_p4, %s4899_s26), 0 }
  0x2b   : > { %4832 = sst [smem:[#allocation22_spill]] %s4901_s26  ;;  %s476_s13 = ssub.s32 %s3942_s22, %s4901_s26 }
  0x2c   : > { %s4138_s14 = scalar_select %p123_p5, %s3926_s19, %s125_s17  }
  0x2d   : > { %p4140_p8 = por %p139_p7, %p138_p6  ;;  %p477_p9 = scmp.eq.s32.totalorder %s476_s13, 0 }
  0x2e   : > { %4833 = sst [smem:[#allocation23_spill]] %s4138_s14  ;;  %s479_s10 = sadd.s32 1, %s3914_s29 }
  0x2f   : > { %s4834_s25 = scalar_select %p4140_p8, 1, 0 }
  0x30   : > { %p489_p10 = scmp.ne.s32.totalorder %s3914_s29, %s3910_s28  ;;  %p490_p11 = scmp.eq.s32.totalorder %s4115_s23, 3 }
  0x31   : > { %s4151_s16 = scalar_select %p477_p9, %s3914_s29, %s479_s10  }
  0x32   : > { %p4153_p12 = por %p490_p11, %p489_p10  ;;  %p495_p13 = scmp.ne.s32.totalorder %s3910_s28, %s3906_s27 }
  0x33   : > { %4835 = sst [smem:[#allocation24_spill]] %s4151_s16  ;;  %p496_p0 = scmp.eq.s32.totalorder %s3071_s24, 3 }
  0x34   : > { %s4836_s30 = scalar_select %p4153_p12, 1, 0 }
  0x35   : > { %p3456_p1 = scmp.lt.s32.totalorder %s3946_s2, 4  ;;  %s4161_s17 = sand.u32 1, %s3926_s19  }
  0x36   : > { %4837 = sst [smem:[#allocation25_spill]] %s4836_s30  ;;  %p4163_p2 = por %p496_p0, %p495_p13 }
  0x37   : > { %s615_s13 = sand.u32 1, %s3946_s2   ;;  %p4170_p4 = pnand %p3456_p1, %p4129_p3 }
  0x38   : > { %s4838_s26 = scalar_select %p4163_p2, 1, 0 }
  0x39   : > { %s4794_s22 = sshll.u32 %s4161_s17, 8  ;;  %s4795_s14 = sshll.u32 %s3938_s21, 12 }
  0x3a   : > { %4839 = sst [smem:[#allocation26_spill]] %s4838_s26  ;;  %s4841_s9 = sld [smem:[#allocation36_spill]] }
  0x3b   : > { %s619_s29 = scalar_lea.vmem [#allocation6], %s4794_s22  ;;  %s4187_s26 = scalar_lea.sflag [#allocation7], %s615_s13 }
  0x3c   : > { %s626_s15 = sshll.u32 %s619_s29, 4  ;;  %p4193_p5 = pneg %p4170_p4  ;;  %s4185_s15 = int_to_ptr.vmem [resolvable:$true] %s626_s15 }
  0x40   : > { %s4181_s19 = scalar_lea.hbm %s4841_s9, %s4795_s14  ;;  %s3735_s22 = scalar_lea.hbm %s4841_s9, 8192 }
  0x41   : > { %s3730_s27 = scalar_lea.hbm %s4181_s19, 4096  ;;  %p3736_p9 = scmp.lt.u32.totalorder %s4181_s19, %s4841_s9 }
  0x42   : > { %p3731_p3 = scmp.ne.s32.totalorder %s4181_s19, %s3730_s27  ;;  %p3737_p10 = scmp.lt.u32.totalorder %s3735_s22, %s3730_s27 }
  0x43   : > { %p3739_p13 = scmp.lt.u32.totalorder %s3730_s27, %s4181_s19 }
  0x44   : > { %p3733_p6 = pnand %p4193_p5, %p3731_p3  ;;  %p3738_p11 = por %p3737_p10, %p3736_p9 }
  0x46   : > { %p3734_p7 = pneg %p3733_p6  ;;  %p3740_p0 = por %p3739_p13, %p3738_p11 }
  0x48   : > { %p3741_p1 = pnand %p3740_p0, %p3734_p7 }
  0x4a   : > { %3744 = shalt.err (!%p3741_p1)
}
  0x4b   : > { %s3745_s13 = scalar_lea.vmem %s4185_s15, 4096  ;;  %s3948_s16 = smov [#allocation6]  }
  0x4c   : > { %p3746_p3 = scmp.ne.s32.totalorder %s4185_s15, %s3745_s13  ;;  %s3750_s24 = sshll.u32 %s3948_s16, 4  ;;  %s3751_s24 = int_to_ptr.vmem [resolvable:$false] %s3750_s24 }
  0x4d   : > { %s3752_s14 = scalar_lea.vmem %s3751_s24, 8192  ;;  %p3753_p12 = scmp.lt.s32.totalorder %s4185_s15, %s3751_s24 }
  0x4e   : > { %p3748_p6 = pnand %p3746_p3, %p4193_p5  ;;  %p3754_p8 = scmp.lt.s32.totalorder %s3752_s14, %s3745_s13 }
  0x50   : > { %p3749_p2 = pneg %p3748_p6  ;;  %p3755_p9 = por %p3754_p8, %p3753_p12 }
  0x52   : > { %p3756_p10 = pnand %p3755_p9, %p3749_p2 }
  0x54   : > { %3759 = shalt.err (!%p3756_p10)
}
  0x55   : > { %s3949_s27 = smov 256   ;;  %s3950_s22 = smov 16  }
  0x56   : > { %3448 = dma.hbm_to_vmem [thread:$0]  (!%p4170_p4), %s4181_s19, 4096, %s4185_s15, %s4187_s26, %s3949_s27, %s3949_s27, %s3950_s22  }
  0x57   : > { %s4843_s29 = sshll.u32 %s3938_s21, 12  ;;  %s4844_s11 = sld [smem:[#allocation38_spill]] }
  0x58   : > { %s4845_s14 = sshll.u32 %s4161_s17, 8  ;;  %p3081_p8 = scmp.ge.s32.totalorder %s3946_s2, 1 }
  0x59   : > { %s647_s9 = scalar_lea.vmem [#allocation8], %s4845_s14  ;;  %p680_p12 = scmp.lt.s32.totalorder %s3946_s2, 5 }
  0x5a   : > { %s654_s12 = sshll.u32 %s647_s9, 4  ;;  %s3430_s7 = smul.u32 192, %s4161_s17  ;;  %s4226_s12 = int_to_ptr.vmem [resolvable:$true] %s654_s12 }
  0x5b   : > { %p4230_p2 = pnand %p3081_p8, %p680_p12  ;;  %s3431_s19 = smul.u32 3072, %s3938_s21 }
  0x5c   : > { %s4847_s3 = sld [smem:[#allocation31_spill]]  ;;  %s565_s9 = scalar_lea.vmem [#allocation3], %s3430_s7 }
  0x5d   : > { %s4222_s24 = scalar_lea.hbm %s4844_s11, %s4843_s29  ;;  %s572_s29 = sshll.u32 %s565_s9, 4  ;;  %s4241_s29 = int_to_ptr.vmem [resolvable:$true] %s572_s29 }
  0x5e   : > { %s4846_s8 = scalar_select %p4230_p2, 1, 0 }
  0x5f   : > { %s562_s13 = scalar_lea.sflag [#allocation4], %s4161_s17 }
  0x62   : > { %s4239_s22 = scalar_lea.hbm %s4847_s3, %s3431_s19  ;;  %s3765_s15 = scalar_lea.hbm %s4847_s3, 6144 }
  0x63   : > { %s3760_s16 = scalar_lea.hbm %s4239_s22, 3072  ;;  %p3766_p0 = scmp.lt.u32.totalorder %s4239_s22, %s4847_s3 }
  0x64   : > { %p3761_p7 = scmp.ne.s32.totalorder %s4239_s22, %s3760_s16  ;;  %p3767_p1 = scmp.lt.u32.totalorder %s3765_s15, %s3760_s16 }
  0x65   : > { %p3769_p6 = scmp.lt.u32.totalorder %s3760_s16, %s4239_s22 }
  0x66   : > { %p3763_p11 = pnand %p3761_p7, %p4193_p5  ;;  %p3768_p3 = por %p3767_p1, %p3766_p0 }
  0x68   : > { %p3764_p13 = pneg %p3763_p11  ;;  %p3770_p9 = por %p3769_p6, %p3768_p3 }
  0x6a   : > { %p3771_p10 = pnand %p3770_p9, %p3764_p13 }
  0x6c   : > { %3774 = shalt.err (!%p3771_p10)
}
  0x6d   : > { %s3775_s7 = scalar_lea.vmem %s4241_s29, 3072  ;;  %s3951_s21 = smov [#allocation3]  }
  0x6e   : > { %p3776_p8 = scmp.ne.s32.totalorder %s4241_s29, %s3775_s7  ;;  %s3780_s9 = sshll.u32 %s3951_s21, 4  ;;  %s3781_s9 = int_to_ptr.vmem [resolvable:$false] %s3780_s9 }
  0x6f   : > { %s3782_s14 = scalar_lea.vmem %s3781_s9, 6144  ;;  %p3783_p11 = scmp.lt.s32.totalorder %s4241_s29, %s3781_s9 }
  0x70   : > { %p3778_p12 = pnand %p3776_p8, %p4193_p5  ;;  %p3784_p2 = scmp.lt.s32.totalorder %s3782_s14, %s3775_s7 }
  0x72   : > { %p3779_p7 = pneg %p3778_p12  ;;  %p3785_p0 = por %p3784_p2, %p3783_p11 }
  0x74   : > { %p3786_p1 = pnand %p3785_p0, %p3779_p7 }
  0x76   : > { %3789 = shalt.err (!%p3786_p1)
}
  0x77   : > { %s3952_s16 = smov 192   ;;  %s3953_s15 = smov 12  }
  0x78   : > { %3445 = dma.hbm_to_vmem [thread:$0]  (!%p4170_p4), %s4239_s22, 3072, %s4241_s29, %s562_s13, %s3952_s16, %s3952_s16, %s3953_s15  }
  0x79   : > { %s3790_s19 = scalar_lea.hbm %s4222_s24, 4096  ;;  %s3795_s21 = scalar_lea.hbm %s4844_s11, 8192 }
  0x7a   : > { %p3791_p13 = scmp.ne.s32.totalorder %s4222_s24, %s3790_s19  ;;  %p3796_p6 = scmp.lt.u32.totalorder %s4222_s24, %s4844_s11 }
  0x7b   : > { %p3797_p9 = scmp.lt.u32.totalorder %s3795_s21, %s3790_s19  ;;  %p3799_p8 = scmp.lt.u32.totalorder %s3790_s19, %s4222_s24 }
  0x7c   : > { %p3793_p2 = pnand %p3791_p13, %p4193_p5 }
  0x7d   : > { %p3798_p10 = por %p3797_p9, %p3796_p6 }
  0x7e   : > { %p3794_p3 = pneg %p3793_p2 }
  0x7f   : > { %p3800_p12 = por %p3799_p8, %p3798_p10 }
  0x81   : > { %p3801_p7 = pnand %p3800_p12, %p3794_p3 }
  0x83   : > { %3804 = shalt.err (!%p3801_p7)
}
  0x84   : > { %s3805_s17 = scalar_lea.vmem %s4226_s12, 4096  ;;  %s3954_s22 = smov [#allocation8]  }
  0x85   : > { %p3806_p11 = scmp.ne.s32.totalorder %s4226_s12, %s3805_s17  ;;  %s3810_s29 = sshll.u32 %s3954_s22, 4  ;;  %s3811_s29 = int_to_ptr.vmem [resolvable:$false] %s3810_s29 }
  0x86   : > { %s3812_s13 = scalar_lea.vmem %s3811_s29, 8192  ;;  %p3813_p13 = scmp.lt.s32.totalorder %s4226_s12, %s3811_s29 }
  0x87   : > { %p3808_p0 = pnand %p3806_p11, %p4193_p5  ;;  %p3814_p2 = scmp.lt.s32.totalorder %s3812_s13, %s3805_s17 }
  0x89   : > { %p3809_p1 = pneg %p3808_p0  ;;  %p3815_p6 = por %p3814_p2, %p3813_p13 }
  0x8b   : > { %p3816_p9 = pnand %p3815_p6, %p3809_p1 }
  0x8d   : > { %3819 = shalt.err (!%p3816_p9)
}
  0x8e   : > { %s3955_s16 = smov 64   ;;  %s3956_s15 = smov 4  }
  0x8f   : > { %3451 = dma.hbm_to_vmem [thread:$0]  (!%p4170_p4), %s4222_s24, 4096, %s4226_s12, %s4187_s26, %s3955_s16, %s3955_s16, %s3956_s15  }
  0x90   : > { %p4848_p5 = scmp.ne.s32.totalorder %s4846_s8, 0 }
  0x92   : > { %684 = sbr.rel (%p4848_p5) target bundleno = 3245 (0xcad), region = 88 }
  0x99   : > { %s4292_s30 = sand.u32 1, %s3922_s0   ;;  %p4849_p3 = scmp.ne.s32.totalorder %s4834_s25, 0 }
  0x9a   : > { %s3432_s19 = smul.u32 192, %s4292_s30  ;;  %s687_s27 = scalar_lea.sflag [#allocation4], %s4292_s30 }
  0x9c   : > { %s4296_s7 = scalar_lea.vmem [#allocation3], %s3432_s19 }
  0x9d   : > { %3893 = dma.done.wait (%p4849_p3), %s687_s27, 3072  }
  0x9e   : > { %3895 = vsyncadd (%p4849_p3), %s687_s27, 4294964224  ;;  %s695_s8 = sand.u32 1, %s4115_s23   ;;  %s3082_s12 = sshll.u32 %s4292_s30, 8 }
  0x9f   : > { %s696_s26 = scalar_lea.sflag [#allocation7], %s695_s8  ;;  %s4304_s10 = scalar_lea.vmem [#allocation6], %s3082_s12 }
  0xa0   : > { %3897 = dma.done.wait (%p4849_p3), %s696_s26, 8192  }
  0xa1   : > { %3899 = vsyncadd (%p4849_p3), %s696_s26, 4294959104  ;;  %p808_p4 = scmp.lt.s32.totalorder %s3934_s20, 1  ;;  %p812_p10 = scmp.lt.s32.totalorder %s3930_s1, 1 }
  0xa2   : > { %s4852_s13 = sld [smem:[#allocation28_spill]]  ;;  %s4853_s4 = sld [smem:[#allocation32_spill]] }
  0xa3   : > { %s4314_s21 = scalar_select %p808_p4, %s3934_s20, 1 }
  0xa4   : > { %s4317_s23 = scalar_select %p812_p10, %s3930_s1, 1 }
  0xa5   : > { %4850 = sst [smem:[#allocation27_spill]] %s4314_s21  ;;  %s3084_s25 = sshll.u32 %s4314_s21, 3 }
  0xa6   : > { %s3433_s15 = smul.u32 3, %s4317_s23  ;;  %s3219_s30 = sshll.u32 %s4317_s23, 6 }
  0xa7   : > { %s4854_s5 = sld [smem:[#allocation33_spill]]  ;;  %s4856_s2 = sld [smem:[#allocation35_spill]] }
  0xa8   : > { %s811_s16 = scalar_lea.vmem %s4852_s13, %s3084_s25  ;;  %s4336_s3 = scalar_lea.vmem %s4853_s4, %s3433_s15 }
  0xa9   : > { %s3087_s19 = sshll.u32 %s4317_s23, 2  ;;  %s4857_s18 = sld [smem:[#allocation39_spill]] }
  0xaa   : > { %s4858_s4 = sld [smem:[#allocation37_spill]]  ;;  %s4860_s22 = sld [smem:[#allocation41_spill]] }
  0xab   : > { %s4369_s29 = scalar_lea.vmem [#allocation8], %s3082_s12  ;;  %p3088_p8 = scmp.ne.s32.totalorder %s3930_s1, 0 }
  0xac   : > { %v851_v0 = vld [vmem:[%s811_s16] sm:$0xff] (!%p3088_p8)  ;;  %s4862_s12 = sld [smem:[#allocation29_spill]] (!%p3088_p8)  ;;  %s4863_s27 = sld [smem:[#allocation30_spill]] (!%p3088_p8) }
  0xad   : > { %s4341_s9 = scalar_lea.vmem %s4854_s5, %s3219_s30  ;;  %s829_s20 = scalar_lea.vmem %s4856_s2, %s4317_s23  ;;  %854 = vadd.xlane.f32.xlu0 (!%p3088_p8), %v851_v0 }
  0xae   : > { %s4859_s30 = sld [smem:[#allocation40_spill]]  ;;  %s4861_s2 = sand.u32 1, %s3910_s28  }
  0xaf   : > { %s836_s24 = scalar_lea.vmem %s4857_s18, %s4317_s23  ;;  %s4373_s13 = scalar_lea.vmem [#allocation9], %s4861_s2 }
  0xb0   : > { %s4359_s21 = scalar_lea.vmem %s4858_s4, %s3087_s19  ;;  %s842_s25 = scalar_lea.vmem %s4860_s22, %s4317_s23 }
  0xb1   : > { %850 = sbr.rel (%p3088_p8) target bundleno = 485 (0x1e5), region = 104 }
  0xb2   : > { %v3089_v9 = vld [vmem:[%s4862_s12] ss:$0 sm:$0xff] (!%p3088_p8) }
  0xb3   : > { %v3090_v11 = vld [vmem:[%s4863_s27] ss:$0 sm:$0xff] (!%p3088_p8) }
  0xb4   : > { %s839_s5 = scalar_lea.vmem %s4859_s30, %s4317_s23 }
 0x13a   : > { %v855_v1 = vpop.xlane.xlu0 %854 }
 0x13b   : > { %v857_v2 = vmul.f32 0.0078125, %v855_v1 }
 0x13d   : > { %v858_v3 = vsub.f32 %v851_v0, %v857_v2 }
 0x13f   : > { %v859_v4 = vmul.f32 %v858_v3, %v858_v3 }
 0x141   : > { %860 = vadd.xlane.f32.xlu0 %v859_v4 }
 0x1ce   : > { %v861_v5 = vpop.xlane.xlu0 %860 }
 0x1cf   : > { %v862_v6 = vmul.f32 0.0078125, %v861_v5 }
 0x1d1   : > { %v863_v7 = vadd.f32 1e-12, %v862_v6 }
 0x1d3   : > { %3560 = vrsqrt.f32 %v863_v7 }
 0x1dd   : > { %v3561_v8 = vpop.eup %3560 }
 0x1de   : > { %v865_v10 = vmul.f32 %v3561_v8, %v858_v3 }
 0x1e0   : > { %v872_v12 = vmul.f32 %v3089_v9, %v865_v10 }
 0x1e2   : > { %v879_v13 = vadd.f32 %v3090_v11, %v872_v12 }
 0x1e4   : > { %880 = vst [vmem:[#allocation2] sm:$0xff] %v879_v13 }
 0x1e5 PF: > { %v3562_v14 = vld [vmem:[%s4296_s7 + $0x4] ss:$12 sps:$4 sm:$0xff]   ;;  %v3564_v15 = vld [vmem:[%s4296_s7] ss:$12 sps:$4 sm:$0xff]   ;;  %v3957_v16 = vmov 0   ;;  %v3958_v33 = vmov 0.0   ;;  %v917_v42 = vlaneseq  ;;  %s4864_s26 = scalar_lea.vmem %s4770_s6, %s4317_s23 }
 0x1e6   : > { %1092 = vmatprep.mubr.bf16.mxu0 %v3957_v16  ;;  %1060 = vmatprep.subr.bf16.mxu0 %v3562_v14  ;;  %v3565_v17 = vld [vmem:[%s4296_s7 + $0x1c] ss:$12 sps:$4 sm:$0xff]   ;;  %v3567_v18 = vld [vmem:[%s4296_s7 + $0x18] ss:$12 sps:$4 sm:$0xff]   ;;  %v3568_v19 = vld [vmem:[%s4296_s7 + $0x34] ss:$12 sps:$4 sm:$0xff]  }
 0x1e7   : > { %1061 = vmatpush1.bf16.msra.mxu0 %v3564_v15  ;;  %v3570_v20 = vld [vmem:[%s4296_s7 + $0x30] ss:$12 sps:$4 sm:$0xff]   ;;  %v3571_v21 = vld [vmem:[%s4296_s7 + $0x4c] ss:$12 sps:$4 sm:$0xff]   ;;  %v3573_v22 = vld [vmem:[%s4296_s7 + $0x48] ss:$12 sps:$4 sm:$0xff]   ;;  %3310 = vmatprep.subr.bf16.mxu1 %v3958_v33 }
 0x1e8   : > { %1062 = vmatprep.subr.bf16.mxu0 %v3565_v17  ;;  %v3574_v23 = vld [vmem:[%s4296_s7 + $0x64] ss:$12 sps:$4 sm:$0xff]   ;;  %v3576_v24 = vld [vmem:[%s4296_s7 + $0x60] ss:$12 sps:$4 sm:$0xff]   ;;  %v3577_v25 = vld [vmem:[%s4296_s7 + $0x7c] ss:$12 sps:$4 sm:$0xff]  }
 0x1e9   : > { %v3579_v26 = vld [vmem:[%s4296_s7 + $0x78] ss:$12 sps:$4 sm:$0xff]   ;;  %v3580_v27 = vld [vmem:[%s4296_s7 + $0x94] ss:$12 sps:$4 sm:$0xff]   ;;  %v3582_v28 = vld [vmem:[%s4296_s7 + $0x90] ss:$12 sps:$4 sm:$0xff]  }
 0x1ea   : > { %v3583_v29 = vld [vmem:[%s4296_s7 + $0xac] ss:$12 sps:$4 sm:$0xff]   ;;  %v3585_v30 = vld [vmem:[%s4296_s7 + $0xa8] ss:$12 sps:$4 sm:$0xff]   ;;  %vm3959_vm0 = vmmov 0   ;;  %v4427_v43 = vshrl.u32 %v917_v42, 7 }
 0x1eb   : > { %1063 = vmatpush1.bf16.msra.mxu0 %v3567_v18  ;;  %v4399_v31 = vld [vmem:[#allocation2] sm:$0xff]  ;;  %3326 = vmatprep.mubr.msk.bf16.mxu1 %vm3959_vm0, %v3958_v33  ;;  %v3586_v34 = vld [vmem:[%s4296_s7 + $0x8] ss:$12 sps:$4 sm:$0xff]   ;;  %v3587_v35 = vld [vmem:[%s4296_s7 + $0x20] ss:$12 sps:$4 sm:$0xff]   ;;  %vm1183_vm1 = vcmask 261120  }
 0x1ec   : > { %1064 = vmatprep.subr.bf16.mxu0 %v3568_v19  ;;  %v882_v32 = vpack.c.bf16 %v4399_v31, %v4399_v31  ;;  %3311 = vmatpush3.bf16.msra.mxu1 %v3586_v34  ;;  %v3588_v36 = vld [vmem:[%s4296_s7 + $0x38] ss:$12 sps:$4 sm:$0xff]   ;;  %v3589_v37 = vld [vmem:[%s4296_s7 + $0x50] ss:$12 sps:$4 sm:$0xff]   ;;  %v3590_v38 = vld [vmem:[%s4296_s7 + $0x68] ss:$12 sps:$4 sm:$0xff]  }
 0x1ed   : > { %3312 = vmatprep.subr.bf16.mxu1 %v3958_v33  ;;  %v3591_v39 = vld [vmem:[%s4296_s7 + $0x80] ss:$12 sps:$4 sm:$0xff]   ;;  %v3592_v40 = vld [vmem:[%s4296_s7 + $0x98] ss:$12 sps:$4 sm:$0xff]   ;;  %v3593_v41 = vld [vmem:[%s4296_s7 + $0xb0] ss:$12 sps:$4 sm:$0xff]  }
 0x1ee   : > { %v919_v44 = vsub.s32 0, %v4427_v43  ;;  %v915_v45 = vld [vmem:[%s4336_s3] sm:$0x7]  ;;  %v923_v46 = vsub.s32 1, %v4427_v43  ;;  %s3960_s7 = smov 96   ;;  %s3961_s3 = smov 32  }
 0x1ef   : > { %1065 = vmatpush1.bf16.msra.mxu0 %v3570_v20  ;;  %s3962_s16 = smov 64   ;;  %v927_v1 = vsub.s32 2, %v4427_v43  ;;  %vm1420_vm2 = vcmask 1043456   ;;  %vm1368_vm3 = vcmask 64512   ;;  %s4865_s30 = sld [smem:[#allocation34_spill]] }
 0x1f0   : > { %1066 = vmatprep.subr.bf16.mxu0 %v3571_v21  ;;  %3313 = vmatpush3.bf16.msra.mxu1 %v3587_v35  ;;  %v920_v47 = vrot.slane %v915_v45, %v919_v44  ;;  %v924_v48 = vrot.slane %v915_v45, %v923_v46  ;;  %p3205_p12 = scmp.ne.s32.totalorder %s3930_s1, 1 }
 0x1f1   : > { %3314 = vmatprep.subr.bf16.mxu1 %v3958_v33  ;;  %v928_v5 = vrot.slane %v915_v45, %v927_v1  ;;  %vm3964_vm8 = vmmov (!%p3205_p12), 0   ;;  %s4874_s2 = sld [smem:[#allocation45_spill]] (!%p3205_p12) }
 0x1f3   : > { %1067 = vmatpush1.bf16.msra.mxu0 %v3573_v22 }
 0x1f4   : > { %1068 = vmatprep.subr.bf16.mxu0 %v3574_v23  ;;  %3315 = vmatpush3.bf16.msra.mxu1 %v3588_v36 }
 0x1f5   : > { %3316 = vmatprep.subr.bf16.mxu1 %v3958_v33  ;;  %s4866_s17 = scalar_lea.vmem %s4865_s30, %s4317_s23 }
 0x1f7   : > { %1069 = vmatpush1.bf16.msra.mxu0 %v3576_v24 }
 0x1f8   : > { %1070 = vmatprep.subr.bf16.mxu0 %v3577_v25  ;;  %3317 = vmatpush3.bf16.msra.mxu1 %v3589_v37 }
 0x1f9   : > { %3318 = vmatprep.subr.bf16.mxu1 %v3958_v33 }
 0x1fb   : > { %1071 = vmatpush1.bf16.msra.mxu0 %v3579_v26 }
 0x1fc   : > { %1072 = vmatprep.subr.bf16.mxu0 %v3580_v27  ;;  %3319 = vmatpush3.bf16.msra.mxu1 %v3590_v38 }
 0x1fd   : > { %3320 = vmatprep.subr.bf16.mxu1 %v3958_v33 }
 0x1ff   : > { %1073 = vmatpush1.bf16.msra.mxu0 %v3582_v28 }
 0x200   : > { %1074 = vmatprep.subr.bf16.mxu0 %v3583_v29  ;;  %3321 = vmatpush3.bf16.msra.mxu1 %v3591_v39 }
 0x201   : > { %3322 = vmatprep.subr.bf16.mxu1 %v3958_v33 }
 0x203   : > { %1075 = vmatpush1.bf16.msra.mxu0 %v3585_v30 }
 0x204   : > { %3330 = vmatprep.subr.bf16.mxu0 %v3958_v33  ;;  %3323 = vmatpush3.bf16.msra.mxu1 %v3592_v40 }
 0x205   : > { %3324 = vmatprep.subr.bf16.mxu1 %v3958_v33 }
 0x206   : > { %1093 = vmatmul.mubr.bf16.vlgmr.msra.gmra.mrb[0].mxu0 %v882_v32 }
 0x207   : > { %3332 = vmatprep.mubr.msk.bf16.mxu0 %vm3959_vm0, %v3958_v33 }
 0x208   : > { %3325 = vmatpush3.bf16.msra.mxu1 %v3593_v41 }
 0x209   : > { %3336 = vmatprep.subr.bf16.mxu1 %v3958_v33 }
 0x20b   : > { %3327 = vmatmul.mubr.bf16.vlgmr.msra.gmra.mrb[0].mxu1 %v882_v32 }
 0x20c   : > { %3338 = vmatprep.mubr.msk.bf16.mxu1 %vm3959_vm0, %v3958_v33 }
 0x2d9   : > { %v1094_v49 = vpop.f32.mrb[0].mxu0 }
 0x2da   : > { %v1095_v50 = vadd.f32 %v1094_v49, %v920_v47  ;;  %v1096_v51 = vpop.f32.mrb[1].mxu0 }
 0x2db   : > { %v1097_v52 = vadd.f32 %v1096_v51, %v924_v48  ;;  %v1098_v53 = vpop.f32.mrb[2].mxu0 }
 0x2dc   : > { %v1099_v54 = vpop.f32.mrb[3].mxu0  ;;  %1142 = vrot.lane.b32.xlu1 %v1095_v50, %s3960_s7  ;;  %v1151_v57 = vpack.c.bf16 %v1095_v50, %v1095_v50 }
 0x2dd   : > { %1156 = vrot.lane.b32.xlu0 %v1097_v52, %s3960_s7  ;;  %v1165_v55 = vpack.c.bf16 %v1097_v52, %v1097_v52 }
 0x2de   : > { %v1135_v8 = vpop.f32.mrb[0].mxu1 }
 0x2df   : > { %v1188_v56 = vsel %vm1183_vm1, %v1165_v55, 0  ;;  %v4458_v10 = vadd.f32 %v1135_v8, %v928_v5  ;;  %v3328_v11 = vpop.f32.mrb[1].mxu1 }
 0x2e0   : > { %3331 = vmatpush3.bf16.xpose.msra.mxu0 %v1188_v56  ;;  %1162 = vrot.lane.b32.xlu1 %v1097_v52, %s3961_s3  ;;  %v1138_v13 = vpop.f32.mrb[2].mxu1 }
 0x2e1   : > { %1159 = vrot.lane.b32.xlu0 %v1097_v52, %s3962_s16  ;;  %3342 = vmatprep.subr.bf16.mxu0 %v3958_v33  ;;  %v3329_v14 = vpop.f32.mrb[3].mxu1  ;;  %v1179_v15 = vpack.c.bf16 %v4458_v10, %v4458_v10 }
 0x2e3   : > { %v1422_v18 = vsel %vm1420_vm2, %v1179_v15, 0 }
 0x2e4   : > { %1148 = vrot.lane.b32.xlu1 %v1095_v50, %s3961_s3 }
 0x2e5   : > { %1145 = vrot.lane.b32.xlu0 %v1095_v50, %s3962_s16 }
 0x2e7   : > { %3333 = vmatmul.mubr.msk.bf16.vlgmr.msra.gmra.mrb[4].mxu0 %vm1183_vm1, %v1151_v57 }
 0x2e8   : > { %3344 = vmatprep.mubr.msk.bf16.mxu0 %vm3959_vm0, %v3958_v33 }
 0x34e   : > { %v1143_v58 = vpop.permute.xlu1 %1142 }
 0x34f   : > { %v1157_v59 = vpop.permute.xlu0 %1156  ;;  %v1152_v4 = vpack.c.bf16 %v1143_v58, %v1143_v58 }
 0x350   : > { %v1166_v60 = vpack.c.bf16 %v1157_v59, %v1157_v59 }
 0x352   : > { %v1234_v61 = vsel %vm1183_vm1, %v1166_v60, 0  ;;  %v1163_v62 = vpop.permute.xlu1 %1162 }
 0x353   : > { %3337 = vmatpush3.bf16.xpose.msra.mxu1 %v1234_v61  ;;  %v1160_v63 = vpop.permute.xlu0 %1159  ;;  %v1168_v2 = vpack.c.bf16 %v1163_v62, %v1163_v62 }
 0x354   : > { %v1167_v0 = vpack.c.bf16 %v1160_v63, %v1160_v63  ;;  %3348 = vmatprep.subr.bf16.mxu1 %v3958_v33 }
 0x355   : > { %v1326_v7 = vsel %vm1183_vm1, %v1168_v2, 0 }
 0x356   : > { %v1280_v3 = vsel %vm1183_vm1, %v1167_v0, 0  ;;  %v1149_v12 = vpop.permute.xlu1 %1148 }
 0x357   : > { %3343 = vmatpush3.bf16.xpose.msra.mxu0 %v1280_v3  ;;  %v1146_v6 = vpop.permute.xlu0 %1145  ;;  %v1154_v17 = vpack.c.bf16 %v1149_v12, %v1149_v12 }
 0x358   : > { %3354 = vmatprep.subr.bf16.mxu0 %v3958_v33  ;;  %v1153_v9 = vpack.c.bf16 %v1146_v6, %v1146_v6 }
 0x35a   : > { %3339 = vmatmul.mubr.msk.bf16.vlgmr.msra.gmra.mrb[4].mxu1 %vm1183_vm1, %v1152_v4 }
 0x35b   : > { %3349 = vmatpush3.bf16.xpose.msra.mxu1 %v1326_v7  ;;  %3350 = vmatprep.mubr.msk.bf16.mxu1 %vm3959_vm0, %v3958_v33 }
 0x35c   : > { %3360 = vmatprep.subr.bf16.mxu1 %v3958_v33 }
 0x35e   : > { %3345 = vmatmul.mubr.msk.bf16.vlgmr.msra.gmra.mrb[8].mxu0 %vm1183_vm1, %v1153_v9 }
 0x35f   : > { %3356 = vmatprep.mubr.msk.bf16.mxu0 %vm3959_vm0, %v3958_v33  ;;  %3355 = vmatpush3.bf16.msra.mxu0 %v1422_v18 }
 0x360   : > { %3366 = vmatprep.subr.bf16.mxu0 %v3958_v33 }
 0x362   : > { %3351 = vmatmul.mubr.msk.bf16.vlgmr.msra.gmra.mrb[8].mxu1 %vm1183_vm1, %v1154_v17 }
 0x363   : > { %3362 = vmatprep.mubr.msk.bf16.mxu1 %vm3959_vm0, %v3958_v33 }
 0x3ba   : > { %v1224_v19 = vpop.f32.mrb[4].mxu0 }
 0x3bb   : > { %v3334_v20 = vpop.f32.mrb[5].mxu0  ;;  %v1369_v21 = vsel %vm1368_vm3, %v1224_v19, -inf }
 0x3bc   : > { %1370 = vmax.xlane.f32.xlu0 %v1369_v21  ;;  %v1227_v22 = vpop.f32.mrb[6].mxu0 }
 0x3bd   : > { %v3335_v23 = vpop.f32.mrb[7].mxu0 }
 0x3be   : > { %v3594_v23 = vld [vmem:[%s4341_s9] sm:$0xff]  }
 0x42d   : > { %v1270_v24 = vpop.f32.mrb[4].mxu1 }
 0x42e   : > { %v3340_v25 = vpop.f32.mrb[5].mxu1  ;;  %v1372_v26 = vsel %vm1368_vm3, %v1270_v24, -inf }
 0x42f   : > { %1373 = vmax.xlane.f32.xlu1 %v1372_v26  ;;  %v1273_v27 = vpop.f32.mrb[6].mxu1 }
 0x430   : > { %v3341_v28 = vpop.f32.mrb[7].mxu1  ;;  %v3595_v27 = vld [vmem:[%s4341_s9 + $0x8] sm:$0xff]  }
 0x431   : > { %v1316_v29 = vpop.f32.mrb[8].mxu0  ;;  %v3596_v28 = vld [vmem:[%s4341_s9 + $0x10] sm:$0xff]  }
 0x432   : > { %v3346_v30 = vpop.f32.mrb[9].mxu0  ;;  %v1375_v32 = vsel %vm1368_vm3, %v1316_v29, -inf }
 0x433   : > { %1376 = vmax.xlane.f32.xlu0 %v1375_v32  ;;  %v1319_v34 = vpop.f32.mrb[10].mxu0  ;;  %v3597_v30 = vld [vmem:[%s4341_s9 + $0x18] sm:$0xff]  }
 0x434   : > { %v3347_v35 = vpop.f32.mrb[11].mxu0  ;;  %v3598_v34 = vld [vmem:[%s4341_s9 + $0x20] sm:$0xff]  }
 0x435   : > { %v1362_v36 = vpop.f32.mrb[8].mxu1 }
 0x436   : > { %v3352_v37 = vpop.f32.mrb[9].mxu1  ;;  %v1378_v38 = vsel %vm1368_vm3, %v1362_v36, -inf }
 0x437   : > { %v1365_v39 = vpop.f32.mrb[10].mxu1  ;;  %1379 = vmax.xlane.f32.xlu0 %v1378_v38 }
 0x438   : > { %v3353_v40 = vpop.f32.mrb[11].mxu1  ;;  %v3599_v39 = vld [vmem:[%s4341_s9 + $0x28] sm:$0xff]  }
 0x440   : > { %1170 = vrot.lane.b32.xlu1 %v4458_v10, %s3960_s7  ;;  %s4871_s7 = sld [smem:[#allocation42_spill]] (!%p3205_p12) }
 0x449   : > { %v1371_v41 = vpop.xlane.xlu0 %1370 }
 0x44a   : > { %v1381_v42 = vsub.f32 %v1224_v19, %v1371_v41  ;;  %v3600_v41 = vld [vmem:[%s4341_s9 + $0x30] sm:$0xff]  }
 0x44c   : > { %v1385_v45 = vmul.f32 1.442695, %v1381_v42 }
 0x44e   : > { %3682 = vpow2.f32 %v1385_v45 }
 0x458   : > { %v3683_v47 = vpop.eup %3682 }
 0x459   : > { %v1393_v48 = vsel %vm1368_vm3, %v3683_v47, 0.0 }
 0x464   : > { %1394 = vadd.xlane.f32.xlu1 %v1393_v48 }
 0x4bc   : > { %v1374_v49 = vpop.xlane.xlu1 %1373 }
 0x4bd   : > { %v1382_v50 = vsub.f32 %v1270_v24, %v1374_v49 }
 0x4bf   : > { %v1387_v51 = vmul.f32 1.442695, %v1382_v50  ;;  %v3601_v50 = vld [vmem:[%s4341_s9 + $0x38] sm:$0xff]  }
 0x4c0   : > { %v1171_v52 = vpop.permute.xlu1 %1170  ;;  %v1377_v53 = vpop.xlane.xlu0 %1376 }
 0x4c1   : > { %3684 = vpow2.f32 %v1387_v51  ;;  %v1180_v54 = vpack.c.bf16 %v1171_v52, %v1171_v52  ;;  %v1383_v55 = vsub.f32 %v1316_v29, %v1377_v53 }
 0x4c3   : > { %v1468_v56 = vsel %vm1420_vm2, %v1180_v54, 0  ;;  %v1389_v57 = vmul.f32 1.442695, %v1383_v55 }
 0x4c4   : > { %3361 = vmatpush3.bf16.msra.mxu1 %v1468_v56  ;;  %v1380_v58 = vpop.xlane.xlu0 %1379 }
 0x4c5   : > { %3686 = vpow2.f32 %v1389_v57  ;;  %v1384_v59 = vsub.f32 %v1362_v36, %v1380_v58  ;;  %3372 = vmatprep.subr.bf16.mxu1 %v3958_v33 }
 0x4c7   : > { %v1391_v60 = vmul.f32 1.442695, %v1384_v59 }
 0x4c9   : > { %3688 = vpow2.f32 %v1391_v60 }
 0x4cb   : > { %v3685_v61 = vpop.eup %3684 }
 0x4cc   : > { %v1396_v62 = vsel %vm1368_vm3, %v3685_v61, 0.0 }
 0x4cd   : > { %1397 = vadd.xlane.f32.xlu0 %v1396_v62 }
 0x4cf   : > { %v3687_v63 = vpop.eup %3686 }
 0x4d0   : > { %v1399_v0 = vsel %vm1368_vm3, %v3687_v63, 0.0 }
 0x4d1   : > { %1400 = vadd.xlane.f32.xlu1 %v1399_v0 }
 0x4d3   : > { %v3689_v2 = vpop.eup %3688 }
 0x4d4   : > { %v1402_v3 = vsel %vm1368_vm3, %v3689_v2, 0.0 }
 0x4d5   : > { %1403 = vadd.xlane.f32.xlu0 %v1402_v3 }
 0x4e2   : > { %1176 = vrot.lane.b32.xlu1 %v4458_v10, %s3961_s3 }
 0x4eb   : > { %1173 = vrot.lane.b32.xlu0 %v4458_v10, %s3962_s16 }
 0x4f1   : > { %v1395_v4 = vpop.xlane.xlu1 %1394 }
 0x4f2   : > { %3690 = vrcp.f32 %v1395_v4 }
 0x4fc   : > { %v3691_v5 = vpop.eup %3690 }
 0x4fd   : > { %v1409_v6 = vmul.f32 %v3691_v5, %v3683_v47 }
 0x4ff   : > { %v1413_v7 = vpack.c.bf16 %v1409_v6, %v1409_v6 }
 0x501   : > { %3357 = vmatmul.mubr.msk.bf16.vlgmr.msra.gmra.mrb[12].mxu0 %vm1368_vm3, %v1413_v7 }
 0x502   : > { %3368 = vmatprep.mubr.msk.bf16.mxu0 %vm3959_vm0, %v3958_v33 }
 0x55a   : > { %v1398_v8 = vpop.xlane.xlu0 %1397 }
 0x55b   : > { %3692 = vrcp.f32 %v1398_v8 }
 0x55e   : > { %v1401_v9 = vpop.xlane.xlu1 %1400 }
 0x55f   : > { %3694 = vrcp.f32 %v1401_v9 }
 0x562   : > { %v1404_v11 = vpop.xlane.xlu0 %1403  ;;  %v1177_v12 = vpop.permute.xlu1 %1176 }
 0x563   : > { %3696 = vrcp.f32 %v1404_v11  ;;  %v1182_v14 = vpack.c.bf16 %v1177_v12, %v1177_v12  ;;  %v3135_v11 = vld [vmem:[%s4864_s26] ss:$0 sm:$0xff] }
 0x565   : > { %v3693_v13 = vpop.eup %3692  ;;  %v1560_v22 = vsel %vm1420_vm2, %v1182_v14, 0 }
 0x566   : > { %v1410_v10 = vmul.f32 %v3693_v13, %v3685_v61  ;;  %v1174_v15 = vpop.permute.xlu0 %1173 }
 0x567   : > { %v1181_v17 = vpack.c.bf16 %v1174_v15, %v1174_v15 }
 0x568   : > { %v1414_v18 = vpack.c.bf16 %v1410_v10, %v1410_v10 }
 0x569   : > { %v3695_v19 = vpop.eup %3694  ;;  %v1514_v20 = vsel %vm1420_vm2, %v1181_v17, 0 }
 0x56a   : > { %v1411_v21 = vmul.f32 %v3695_v19, %v3687_v63  ;;  %3363 = vmatmul.mubr.msk.bf16.vlgmr.msra.gmra.mrb[12].mxu1 %vm1368_vm3, %v1414_v18  ;;  %3367 = vmatpush3.bf16.msra.mxu0 %v1514_v20  ;;  %v3602_v18 = vld [vmem:[%s4304_s10] ss:$16 sps:$4 sm:$0xff]   ;;  %v3604_v19 = vld [vmem:[%s4304_s10 + $0x4] ss:$16 sps:$4 sm:$0xff]   ;;  %v3605_v20 = vld [vmem:[%s4304_s10 + $0x8] ss:$16 sps:$4 sm:$0xff]  }
 0x56b   : > { %3373 = vmatpush3.bf16.msra.mxu1 %v1560_v22  ;;  %3374 = vmatprep.mubr.msk.bf16.mxu1 %vm3959_vm0, %v3958_v33  ;;  %v3610_v22 = vld [vmem:[%s4304_s10 + $0x24] ss:$16 sps:$4 sm:$0xff]  }
 0x56c   : > { %v1415_v24 = vpack.c.bf16 %v1411_v21, %v1411_v21  ;;  %3378 = vmatprep.subr.bf16.mxu0 %v3958_v33  ;;  %3386 = vmatprep.subr.bf16.mxu1 %v3958_v33  ;;  %v3607_v21 = vld [vmem:[%s4304_s10 + $0xc] ss:$16 sps:$4 sm:$0xff]  }
 0x56d   : > { %v3697_v25 = vpop.eup %3696 }
 0x56e   : > { %v1412_v26 = vmul.f32 %v3697_v25, %v3689_v2  ;;  %3369 = vmatmul.mubr.msk.bf16.vlgmr.msra.gmra.mrb[16].mxu0 %vm1368_vm3, %v1415_v24  ;;  %v3608_v24 = vld [vmem:[%s4304_s10 + $0x20] ss:$16 sps:$4 sm:$0xff]   ;;  %v3611_v25 = vld [vmem:[%s4304_s10 + $0x28] ss:$16 sps:$4 sm:$0xff]  }
 0x56f   : > { %3379 = vmatpush3.bf16.msra.mxu0 %v3594_v23  ;;  %3382 = vmatprep.mubr.msk.bf16.mxu0 %vm3959_vm0, %v3958_v33  ;;  %v3613_v23 = vld [vmem:[%s4304_s10 + $0x2c] ss:$16 sps:$4 sm:$0xff]  }
 0x570   : > { %v1416_v29 = vpack.c.bf16 %v1412_v26, %v1412_v26  ;;  %3380 = vmatprep.subr.bf16.mxu0 %v3958_v33  ;;  %v3616_v26 = vld [vmem:[%s4304_s10 + $0x44] ss:$16 sps:$4 sm:$0xff]  }
 0x572   : > { %3375 = vmatmul.mubr.msk.bf16.vlgmr.msra.gmra.mrb[16].mxu1 %vm1368_vm3, %v1416_v29 }
 0x573   : > { %3381 = vmatpush3.bf16.msra.mxu0 %v3595_v27  ;;  %3387 = vmatpush3.bf16.msra.mxu1 %v3596_v28  ;;  %v3614_v27 = vld [vmem:[%s4304_s10 + $0x40] ss:$16 sps:$4 sm:$0xff]   ;;  %v3617_v28 = vld [vmem:[%s4304_s10 + $0x48] ss:$16 sps:$4 sm:$0xff]  }
 0x574   : > { %3388 = vmatprep.subr.bf16.mxu1 %v3958_v33  ;;  %3394 = vmatprep.subr.bf16.mxu0 %v3958_v33 }
 0x575   : > { %3390 = vmatprep.mubr.msk.bf16.mxu1 %vm3959_vm0, %v3958_v33 }
 0x577   : > { %3389 = vmatpush3.bf16.msra.mxu1 %v3597_v30 }
 0x578   : > { %3402 = vmatprep.subr.bf16.mxu1 %v3958_v33 }
 0x5d4   : > { %v1458_v32 = vpop.f32.mrb[12].mxu0 }
 0x5d5   : > { %v1602_v35 = vpack.c.bf16 %v1458_v32, %v1458_v32  ;;  %v3358_v36 = vpop.f32.mrb[13].mxu0 }
 0x5d6   : > { %v1461_v37 = vpop.f32.mrb[14].mxu0  ;;  %v3625_v36 = vld [vmem:[%s4304_s10 + $0x6c] ss:$16 sps:$4 sm:$0xff]  }
 0x5d7   : > { %v3359_v38 = vpop.f32.mrb[15].mxu0  ;;  %3383 = vmatmul.mubr.msk.bf16.vlgmr.msra.gmra.mrb[20].mxu0 %vm1183_vm1, %v1602_v35  ;;  %v3622_v35 = vld [vmem:[%s4304_s10 + $0x64] ss:$16 sps:$4 sm:$0xff]   ;;  %v3620_v37 = vld [vmem:[%s4304_s10 + $0x60] ss:$16 sps:$4 sm:$0xff]  }
 0x5d8   : > { %3395 = vmatpush3.bf16.msra.mxu0 %v3598_v34  ;;  %3398 = vmatprep.mubr.msk.bf16.mxu0 %vm3959_vm0, %v3958_v33  ;;  %v3623_v38 = vld [vmem:[%s4304_s10 + $0x68] ss:$16 sps:$4 sm:$0xff]  }
 0x5d9   : > { %3396 = vmatprep.subr.bf16.mxu0 %v3958_v33 }
 0x5dc   : > { %3397 = vmatpush3.bf16.msra.mxu0 %v3599_v39  ;;  %v3628_v39 = vld [vmem:[%s4304_s10 + $0x84] ss:$16 sps:$4 sm:$0xff]  }
 0x5dd   : > { %2097 = vmatprep.subr.bf16.mxu0 %v3604_v19  ;;  %v3665_v19 = vld [vmem:[%s4369_s29 + $0x98] sm:$0xff]  }
 0x63d   : > { %v1504_v40 = vpop.f32.mrb[12].mxu1 }
 0x63e   : > { %v1603_v42 = vpack.c.bf16 %v1504_v40, %v1504_v40  ;;  %v3364_v45 = vpop.f32.mrb[13].mxu1  ;;  %v3631_v40 = vld [vmem:[%s4304_s10 + $0x8c] ss:$16 sps:$4 sm:$0xff]  }
 0x63f   : > { %v1507_v47 = vpop.f32.mrb[14].mxu1  ;;  %v3634_v45 = vld [vmem:[%s4304_s10 + $0xa4] ss:$16 sps:$4 sm:$0xff]  }
 0x640   : > { %v3365_v48 = vpop.f32.mrb[15].mxu1  ;;  %3391 = vmatmul.mubr.msk.bf16.vlgmr.msra.gmra.mrb[20].mxu1 %vm1183_vm1, %v1603_v42  ;;  %v3629_v42 = vld [vmem:[%s4304_s10 + $0x88] ss:$16 sps:$4 sm:$0xff]   ;;  %v3637_v47 = vld [vmem:[%s4304_s10 + $0xac] ss:$16 sps:$4 sm:$0xff]  }
 0x641   : > { %v1550_v49 = vpop.f32.mrb[16].mxu0  ;;  %3403 = vmatpush3.bf16.msra.mxu1 %v3600_v41  ;;  %3406 = vmatprep.mubr.msk.bf16.mxu1 %vm3959_vm0, %v3958_v33  ;;  %v3626_v41 = vld [vmem:[%s4304_s10 + $0x80] ss:$16 sps:$4 sm:$0xff]  }
 0x642   : > { %v1604_v51 = vpack.c.bf16 %v1550_v49, %v1550_v49  ;;  %v3370_v52 = vpop.f32.mrb[17].mxu0  ;;  %3404 = vmatprep.subr.bf16.mxu1 %v3958_v33  ;;  %v3632_v48 = vld [vmem:[%s4304_s10 + $0xa0] ss:$16 sps:$4 sm:$0xff]   ;;  %v3635_v49 = vld [vmem:[%s4304_s10 + $0xa8] ss:$16 sps:$4 sm:$0xff]  }
 0x643   : > { %v1553_v53 = vpop.f32.mrb[18].mxu0  ;;  %v3638_v52 = vld [vmem:[%s4304_s10 + $0xc0] ss:$16 sps:$4 sm:$0xff]  }
 0x644   : > { %v3371_v54 = vpop.f32.mrb[19].mxu0  ;;  %3399 = vmatmul.mubr.msk.bf16.vlgmr.msra.gmra.mrb[24].mxu0 %vm1183_vm1, %v1604_v51  ;;  %v3643_v51 = vld [vmem:[%s4304_s10 + $0xcc] ss:$16 sps:$4 sm:$0xff]   ;;  %v3641_v53 = vld [vmem:[%s4304_s10 + $0xc8] ss:$16 sps:$4 sm:$0xff]  }
 0x645   : > { %v1596_v55 = vpop.f32.mrb[16].mxu1  ;;  %3405 = vmatpush3.bf16.msra.mxu1 %v3601_v50  ;;  %2129 = vmatprep.mubr.bf16.mxu0 %v3957_v16  ;;  %v3640_v50 = vld [vmem:[%s4304_s10 + $0xc4] ss:$16 sps:$4 sm:$0xff]  }
 0x646   : > { %v1605_v56 = vpack.c.bf16 %v1596_v55, %v1596_v55  ;;  %v3376_v57 = vpop.f32.mrb[17].mxu1  ;;  %2138 = vmatprep.subr.bf16.mxu1 %v3607_v21  ;;  %2098 = vmatpush1.bf16.msra.mxu0 %v3602_v18  ;;  %v3646_v54 = vld [vmem:[%s4304_s10 + $0xe4] ss:$16 sps:$4 sm:$0xff]   ;;  %v3649_v55 = vld [vmem:[%s4304_s10 + $0xec] ss:$16 sps:$4 sm:$0xff]  }
 0x647   : > { %v1599_v58 = vpop.f32.mrb[18].mxu1  ;;  %2099 = vmatprep.subr.bf16.mxu0 %v3610_v22  ;;  %v3647_v57 = vld [vmem:[%s4304_s10 + $0xe8] ss:$16 sps:$4 sm:$0xff]   ;;  %v3667_v21 = vld [vmem:[%s4369_s29 + $0xe0] sm:$0xff]  }
 0x648   : > { %v3377_v59 = vpop.f32.mrb[19].mxu1  ;;  %3407 = vmatmul.mubr.msk.bf16.vlgmr.msra.gmra.mrb[24].mxu1 %vm1183_vm1, %v1605_v56  ;;  %v3644_v56 = vld [vmem:[%s4304_s10 + $0xe0] ss:$16 sps:$4 sm:$0xff]   ;;  %v3664_v18 = vld [vmem:[%s4369_s29 + $0x18] sm:$0xff]  }
 0x649   : > { %2170 = vmatprep.mubr.bf16.mxu1 %v3957_v16  ;;  %2139 = vmatpush1.bf16.msra.mxu1 %v3605_v20  ;;  %v3666_v20 = vld [vmem:[%s4369_s29 + $0x60] sm:$0xff]  }
 0x64a   : > { %2140 = vmatprep.subr.bf16.mxu1 %v3613_v23  ;;  %2100 = vmatpush1.bf16.msra.mxu0 %v3608_v24  ;;  %v3668_v22 = vld [vmem:[%s4369_s29 + $0x20] sm:$0xff]   ;;  %v3670_v24 = vld [vmem:[%s4369_s29 + $0x68] sm:$0xff]  }
 0x64b   : > { %2101 = vmatprep.subr.bf16.mxu0 %v3616_v26  ;;  %v3669_v23 = vld [vmem:[%s4369_s29 + $0xa0] sm:$0xff]   ;;  %v3672_v26 = vld [vmem:[%s4369_s29 + $0x28] sm:$0xff]  }
 0x64d   : > { %2141 = vmatpush1.bf16.msra.mxu1 %v3611_v25  ;;  %v3671_v25 = vld [vmem:[%s4369_s29 + $0xe8] sm:$0xff]  }
 0x64e   : > { %2102 = vmatpush1.bf16.msra.mxu0 %v3614_v27  ;;  %v3674_v27 = vld [vmem:[%s4369_s29 + $0x70] sm:$0xff]  }
 0x64f   : > { %2103 = vmatprep.subr.bf16.mxu0 %v3622_v35  ;;  %v3680_v35 = vld [vmem:[%s4369_s29 + $0x38] sm:$0xff]  }
 0x652   : > { %2104 = vmatpush1.bf16.msra.mxu0 %v3620_v37  ;;  %v1915_v37 = vld [vmem:[%s4359_s21] sm:$0xf]  ;;  %s4873_s21 = sld [smem:[#allocation27_spill]] (!%p3205_p12) }
 0x653   : > { %2105 = vmatprep.subr.bf16.mxu0 %v3628_v39  ;;  %v1920_v39 = vrot.slane %v1915_v37, %v919_v44 }
 0x656   : > { %2106 = vmatpush1.bf16.msra.mxu0 %v3626_v41  ;;  %v1924_v41 = vrot.slane %v1915_v37, %v923_v46 }
 0x657   : > { %2107 = vmatprep.subr.bf16.mxu0 %v3634_v45 }
 0x658   : > { %s4875_s4 = scalar_lea.vmem (!%p3205_p12), %s4874_s2, %s4873_s21 }
 0x65a   : > { %2108 = vmatpush1.bf16.msra.mxu0 %v3632_v48 }
 0x65b   : > { %2109 = vmatprep.subr.bf16.mxu0 %v3640_v50 }
 0x65e   : > { %2110 = vmatpush1.bf16.msra.mxu0 %v3638_v52 }
 0x65f   : > { %2111 = vmatprep.subr.bf16.mxu0 %v3646_v54 }
 0x662   : > { %2112 = vmatpush1.bf16.msra.mxu0 %v3644_v56 }
 0x6aa   : > { %v1671_v60 = vpop.f32.mrb[20].mxu0 }
 0x6ab   : > { %v3384_v61 = vpop.f32.mrb[21].mxu0 }
 0x6ac   : > { %v1674_v33 = vpop.f32.mrb[22].mxu0 }
 0x6ad   : > { %v3385_v62 = vpop.f32.mrb[23].mxu0  ;;  %v3136_v33 = vld [vmem:[%s4866_s17] ss:$0 sm:$0xff] }
 0x713   : > { %v1726_v63 = vpop.f32.mrb[20].mxu1 }
 0x714   : > { %v1842_v0 = vadd.f32 %v1726_v63, %v1671_v60  ;;  %v3392_v2 = vpop.f32.mrb[21].mxu1  ;;  %v3137_v63 = vld [vmem:[%s829_s20] ss:$0 sm:$0xff]  ;;  %s4872_s20 = sld [smem:[#allocation43_spill]] (!%p3205_p12) }
 0x715   : > { %v1729_v3 = vpop.f32.mrb[22].mxu1 }
 0x716   : > { %v3393_v4 = vpop.f32.mrb[23].mxu1 }
 0x717   : > { %v1781_v5 = vpop.f32.mrb[24].mxu0  ;;  %v3650_v4 = vld [vmem:[%s4369_s29 + $0x40] sm:$0xff]  }
 0x718   : > { %v1843_v6 = vadd.f32 %v1842_v0, %v1781_v5  ;;  %v3400_v7 = vpop.f32.mrb[25].mxu0  ;;  %v3651_v5 = vld [vmem:[%s4369_s29 + $0xc0] sm:$0xff]   ;;  %3257 = vmatprep.subr.bf16.mxu0 %v3650_v4 }
 0x719   : > { %v1784_v8 = vpop.f32.mrb[26].mxu0  ;;  %v3653_v7 = vld [vmem:[%s4369_s29 + $0x80] sm:$0xff]  }
 0x71a   : > { %v3401_v16 = vpop.f32.mrb[27].mxu0  ;;  %v3654_v8 = vld [vmem:[%s4369_s29 + $0x48] sm:$0xff]  }
 0x71b   : > { %v1836_v9 = vpop.f32.mrb[24].mxu1  ;;  %v3655_v16 = vld [vmem:[%s4369_s29 + $0xc8] sm:$0xff]  }
 0x71c   : > { %v1844_v12 = vadd.f32 %v1843_v6, %v1836_v9  ;;  %v3408_v13 = vpop.f32.mrb[25].mxu1  ;;  %v3652_v6 = vld [vmem:[%s4369_s29] sm:$0xff]   ;;  %v3656_v9 = vld [vmem:[%s4369_s29 + $0x8] sm:$0xff]  }
 0x71d   : > { %v1839_v10 = vpop.f32.mrb[26].mxu1  ;;  %v3659_v13 = vld [vmem:[%s4369_s29 + $0xd0] sm:$0xff]  }
 0x71e   : > { %v1852_v14 = vadd.f32 %v3135_v11, %v1844_v12  ;;  %v3409_v15 = vpop.f32.mrb[27].mxu1  ;;  %v3657_v11 = vld [vmem:[%s4369_s29 + $0x88] sm:$0xff]   ;;  %v3658_v12 = vld [vmem:[%s4369_s29 + $0x50] sm:$0xff]  }
 0x71f   : > { %v3660_v10 = vld [vmem:[%s4369_s29 + $0x10] sm:$0xff]   ;;  %v3662_v15 = vld [vmem:[%s4369_s29 + $0x58] sm:$0xff]  }
 0x720   : > { %v1853_v17 = vadd.f32 %v1852_v14, %v4399_v31  ;;  %v3619_v31 = vld [vmem:[%s4304_s10 + $0x4c] ss:$16 sps:$4 sm:$0xff]   ;;  %v3661_v14 = vld [vmem:[%s4369_s29 + $0x90] sm:$0xff]  }
 0x721   : > { %2142 = vmatprep.subr.bf16.mxu1 %v3619_v31  ;;  %v3673_v31 = vld [vmem:[%s4369_s29 + $0xa8] sm:$0xff]  }
 0x722   : > { %1856 = vadd.xlane.f32.xlu1 %v1853_v17  ;;  %2143 = vmatpush1.bf16.msra.mxu1 %v3617_v28  ;;  %v3675_v28 = vld [vmem:[%s4369_s29 + $0xf0] sm:$0xff]  }
 0x723   : > { %2144 = vmatprep.subr.bf16.mxu1 %v3625_v36  ;;  %v3681_v36 = vld [vmem:[%s4369_s29 + $0xb8] sm:$0xff]  }
 0x726   : > { %2145 = vmatpush1.bf16.msra.mxu1 %v3623_v38  ;;  %v1931_v38 = vsub.s32 3, %v4427_v43 }
 0x727   : > { %2146 = vmatprep.subr.bf16.mxu1 %v3631_v40  ;;  %v1928_v40 = vrot.slane %v1915_v37, %v927_v1 }
 0x72a   : > { %2147 = vmatpush1.bf16.msra.mxu1 %v3629_v42  ;;  %v1932_v42 = vrot.slane %v1915_v37, %v1931_v38 }
 0x72b   : > { %2148 = vmatprep.subr.bf16.mxu1 %v3637_v47 }
 0x72e   : > { %2149 = vmatpush1.bf16.msra.mxu1 %v3635_v49 }
 0x72f   : > { %2150 = vmatprep.subr.bf16.mxu1 %v3643_v51 }
 0x732   : > { %2151 = vmatpush1.bf16.msra.mxu1 %v3641_v53 }
 0x733   : > { %2152 = vmatprep.subr.bf16.mxu1 %v3649_v55 }
 0x736   : > { %2153 = vmatpush1.bf16.msra.mxu1 %v3647_v57 }
 0x737   : > { %3279 = vmatprep.subr.bf16.mxu1 %v3651_v5 }
 0x7af   : > { %v1857_v29 = vpop.xlane.xlu1 %1856 }
 0x7b0   : > { %v1859_v30 = vmul.f32 0.0078125, %v1857_v29  ;;  %v3676_v29 = vld [vmem:[%s4369_s29 + $0x30] sm:$0xff]  }
 0x7b2   : > { %v1860_v32 = vsub.f32 %v1853_v17, %v1859_v30  ;;  %v3663_v17 = vld [vmem:[%s4369_s29 + $0xd8] sm:$0xff]   ;;  %v3677_v30 = vld [vmem:[%s4369_s29 + $0xb0] sm:$0xff]  }
 0x7b4   : > { %v1861_v34 = vmul.f32 %v1860_v32, %v1860_v32 }
 0x7b6   : > { %1862 = vadd.xlane.f32.xlu0 %v1861_v34  ;;  %v3679_v34 = vld [vmem:[%s4369_s29 + $0xf8] sm:$0xff]  }
 0x843   : > { %v1863_v58 = vpop.xlane.xlu0 %1862 }
 0x844   : > { %v1864_v59 = vmul.f32 0.0078125, %v1863_v58 }
 0x846   : > { %v1865_v60 = vadd.f32 1e-12, %v1864_v59 }
 0x848   : > { %3698 = vrsqrt.f32 %v1865_v60 }
 0x852   : > { %v3699_v61 = vpop.eup %3698 }
 0x853   : > { %v1867_v62 = vmul.f32 %v3699_v61, %v1860_v32  ;;  %v3678_v32 = vld [vmem:[%s4369_s29 + $0x78] sm:$0xff]  }
 0x855   : > { %v1874_v0 = vmul.f32 %v3136_v33, %v1867_v62 }
 0x857   : > { %v4575_v2 = vadd.f32 %v3137_v63, %v1874_v0 }
 0x859   : > { %v1882_v3 = vpack.c.bf16 %v4575_v2, %v4575_v2 }
 0x85b   : > { %2130 = vmatmul.mubr.bf16.vlgmr.msra.gmra.mrb[28].mxu0 %v1882_v3  ;;  %2171 = vmatmul.mubr.bf16.vlgmr.msra.gmra.mrb[28].mxu1 %v1882_v3 }
 0x85c   : > { %3258 = vmatpush3.bf16.msra.mxu0 %v3652_v6  ;;  %3280 = vmatpush3.bf16.msra.mxu1 %v3653_v7 }
 0x85d   : > { %3259 = vmatprep.subr.bf16.mxu0 %v3654_v8  ;;  %3281 = vmatprep.subr.bf16.mxu1 %v3655_v16 }
 0x860   : > { %3260 = vmatpush3.bf16.msra.mxu0 %v3656_v9  ;;  %3282 = vmatpush3.bf16.msra.mxu1 %v3657_v11 }
 0x861   : > { %3261 = vmatprep.subr.bf16.mxu0 %v3658_v12  ;;  %3283 = vmatprep.subr.bf16.mxu1 %v3659_v13 }
 0x864   : > { %3262 = vmatpush3.bf16.msra.mxu0 %v3660_v10  ;;  %3284 = vmatpush3.bf16.msra.mxu1 %v3661_v14 }
 0x865   : > { %3263 = vmatprep.subr.bf16.mxu0 %v3662_v15  ;;  %3285 = vmatprep.subr.bf16.mxu1 %v3663_v17 }
 0x868   : > { %3264 = vmatpush3.bf16.msra.mxu0 %v3664_v18  ;;  %3286 = vmatpush3.bf16.msra.mxu1 %v3665_v19 }
 0x869   : > { %3265 = vmatprep.subr.bf16.mxu0 %v3666_v20  ;;  %3287 = vmatprep.subr.bf16.mxu1 %v3667_v21 }
 0x86c   : > { %3266 = vmatpush3.bf16.msra.mxu0 %v3668_v22  ;;  %3288 = vmatpush3.bf16.msra.mxu1 %v3669_v23 }
 0x86d   : > { %3267 = vmatprep.subr.bf16.mxu0 %v3670_v24  ;;  %3289 = vmatprep.subr.bf16.mxu1 %v3671_v25 }
 0x870   : > { %3268 = vmatpush3.bf16.msra.mxu0 %v3672_v26  ;;  %3290 = vmatpush3.bf16.msra.mxu1 %v3673_v31 }
 0x871   : > { %3269 = vmatprep.subr.bf16.mxu0 %v3674_v27  ;;  %3291 = vmatprep.subr.bf16.mxu1 %v3675_v28 }
 0x874   : > { %3270 = vmatpush3.bf16.msra.mxu0 %v3676_v29  ;;  %3292 = vmatpush3.bf16.msra.mxu1 %v3677_v30 }
 0x875   : > { %3271 = vmatprep.subr.bf16.mxu0 %v3678_v32  ;;  %3293 = vmatprep.subr.bf16.mxu1 %v3679_v34 }
 0x878   : > { %3272 = vmatpush3.bf16.msra.mxu0 %v3680_v35  ;;  %3294 = vmatpush3.bf16.msra.mxu1 %v3681_v36 }
 0x92e   : > { %v2131_v45 = vpop.f32.mrb[28].mxu0  ;;  %v2172_v47 = vpop.f32.mrb[28].mxu1 }
 0x92f   : > { %v4619_v48 = vadd.f32 %v2131_v45, %v1920_v39  ;;  %v4621_v49 = vadd.f32 %v2172_v47, %v1928_v40  ;;  %v2133_v50 = vpop.f32.mrb[29].mxu0  ;;  %v2174_v51 = vpop.f32.mrb[29].mxu1 }
 0x930   : > { %v4623_v52 = vadd.f32 %v2133_v50, %v1924_v41  ;;  %v4625_v53 = vadd.f32 %v2174_v51, %v1932_v42  ;;  %v2135_v44 = vpop.f32.mrb[30].mxu0  ;;  %v2176_v54 = vpop.f32.mrb[30].mxu1 }
 0x931   : > { %v4628_v1 = vmul.f32 0.70710677, %v4619_v48  ;;  %v4631_v43 = vmul.f32 0.70710677, %v4621_v49  ;;  %v2136_v3 = vpop.f32.mrb[31].mxu0  ;;  %v2177_v4 = vpop.f32.mrb[31].mxu1 }
 0x932   : > { %v4634_v46 = vmul.f32 0.70710677, %v4623_v52  ;;  %v4637_v55 = vmul.f32 0.70710677, %v4625_v53 }
 0x933   : > { %v2187_v56 = vand.u32 2147483647, %v4628_v1  ;;  %v2189_v57 = vand.u32 2147483647, %v4631_v43  ;;  %vm2267_vm4 = vcmp.lt.f32.partialorder %v4628_v1, 0.0  ;;  %vm2269_vm5 = vcmp.lt.f32.partialorder %v4631_v43, 0.0 }
 0x934   : > { %v2188_v58 = vand.u32 2147483647, %v4634_v46  ;;  %v2190_v59 = vand.u32 2147483647, %v4637_v55  ;;  %vm2268_vm6 = vcmp.lt.f32.partialorder %v4634_v46, 0.0  ;;  %vm2270_vm7 = vcmp.lt.f32.partialorder %v4637_v55, 0.0 }
 0x935   : > { %v2191_v60 = vmul.f32 0.3275911, %v2187_v56  ;;  %v2193_v61 = vmul.f32 0.3275911, %v2189_v57  ;;  %v2243_v7 = vsub.f32 0.0, %v2187_v56  ;;  %v2245_v8 = vsub.f32 0.0, %v2189_v57 }
 0x936   : > { %v2192_v33 = vmul.f32 0.3275911, %v2188_v58  ;;  %v2194_v0 = vmul.f32 0.3275911, %v2190_v59  ;;  %v2244_v11 = vsub.f32 0.0, %v2188_v58  ;;  %v2246_v15 = vsub.f32 0.0, %v2190_v59 }
 0x937   : > { %v2195_v62 = vadd.f32 1.0, %v2191_v60  ;;  %v2197_v63 = vadd.f32 1.0, %v2193_v61  ;;  %v2247_v9 = vmul.f32 %v2243_v7, %v2187_v56  ;;  %v2249_v10 = vmul.f32 %v2245_v8, %v2189_v57 }
 0x938   : > { %v2196_v5 = vadd.f32 1.0, %v2192_v33  ;;  %v2198_v6 = vadd.f32 1.0, %v2194_v0  ;;  %v2248_v21 = vmul.f32 %v2244_v11, %v2188_v58  ;;  %v2250_v31 = vmul.f32 %v2246_v15, %v2190_v59 }
 0x939   : > { %3700 = vrcp.f32 %v2195_v62  ;;  %v2251_v19 = vmul.f32 1.442695, %v2247_v9  ;;  %v2255_v23 = vmul.f32 1.442695, %v2249_v10  ;;  %v2181_v43 = vmul.f32 0.5, %v4621_v49 }
 0x93a   : > { %3702 = vrcp.f32 %v2197_v63  ;;  %v2253_v32 = vmul.f32 1.442695, %v2248_v21  ;;  %v2257_v38 = vmul.f32 1.442695, %v2250_v31  ;;  %v3170_v49 = vld [vmem:[%s836_s24] ss:$0 sm:$0xff] }
 0x93b   : > { %3704 = vrcp.f32 %v2196_v5 }
 0x93c   : > { %3706 = vrcp.f32 %v2198_v6 }
 0x93d   : > { %3708 = vpow2.f32 %v2251_v19 }
 0x93e   : > { %3710 = vpow2.f32 %v2255_v23 }
 0x93f   : > { %3712 = vpow2.f32 %v2253_v32 }
 0x940   : > { %3714 = vpow2.f32 %v2257_v38 }
 0x943   : > { %v3701_v16 = vpop.eup %3700 }
 0x944   : > { %v3703_v12 = vpop.eup %3702  ;;  %v2207_v13 = vmul.f32 1.0614054, %v3701_v16 }
 0x945   : > { %v2209_v14 = vmul.f32 1.0614054, %v3703_v12  ;;  %v3705_v18 = vpop.eup %3704 }
 0x946   : > { %v2211_v17 = vadd.f32 -1.4531521, %v2207_v13  ;;  %v2208_v24 = vmul.f32 1.0614054, %v3705_v18  ;;  %v3707_v25 = vpop.eup %3706 }
 0x947   : > { %v2213_v20 = vadd.f32 -1.4531521, %v2209_v14  ;;  %v2210_v29 = vmul.f32 1.0614054, %v3707_v25  ;;  %v3709_v61 = vpop.eup %3708 }
 0x948   : > { %v2215_v22 = vmul.f32 %v3701_v16, %v2211_v17  ;;  %v2212_v28 = vadd.f32 -1.4531521, %v2208_v24  ;;  %v3711_v62 = vpop.eup %3710 }
 0x949   : > { %v2217_v26 = vmul.f32 %v3703_v12, %v2213_v20  ;;  %v2214_v36 = vadd.f32 -1.4531521, %v2210_v29  ;;  %v3713_v8 = vpop.eup %3712 }
 0x94a   : > { %v2219_v27 = vadd.f32 1.4214138, %v2215_v22  ;;  %v2216_v35 = vmul.f32 %v3705_v18, %v2212_v28  ;;  %v3715_v14 = vpop.eup %3714  ;;  %v2182_v28 = vmul.f32 0.5, %v4625_v53 }
 0x94b   : > { %v2221_v30 = vadd.f32 1.4214138, %v2217_v26  ;;  %v2218_v41 = vmul.f32 %v3707_v25, %v2214_v36  ;;  %v2180_v26 = vmul.f32 0.5, %v4623_v52 }
 0x94c   : > { %v2223_v34 = vmul.f32 %v3701_v16, %v2219_v27  ;;  %v2220_v40 = vadd.f32 1.4214138, %v2216_v35 }
 0x94d   : > { %v2225_v37 = vmul.f32 %v3703_v12, %v2221_v30  ;;  %v2222_v50 = vadd.f32 1.4214138, %v2218_v41 }
 0x94e   : > { %v2227_v39 = vadd.f32 -0.28449672, %v2223_v34  ;;  %v2224_v47 = vmul.f32 %v3705_v18, %v2220_v40 }
 0x94f   : > { %v2229_v42 = vadd.f32 -0.28449672, %v2225_v37  ;;  %v2226_v56 = vmul.f32 %v3707_v25, %v2222_v50 }
 0x950   : > { %v2231_v45 = vmul.f32 %v3701_v16, %v2227_v39  ;;  %v2228_v54 = vadd.f32 -0.28449672, %v2224_v47 }
 0x951   : > { %v2233_v51 = vmul.f32 %v3703_v12, %v2229_v42  ;;  %v2230_v60 = vadd.f32 -0.28449672, %v2226_v56 }
 0x952   : > { %v2235_v44 = vadd.f32 0.2548296, %v2231_v45  ;;  %v2232_v59 = vmul.f32 %v3705_v18, %v2228_v54 }
 0x953   : > { %v2237_v57 = vadd.f32 0.2548296, %v2233_v51  ;;  %v2234_v3 = vmul.f32 %v3707_v25, %v2230_v60 }
 0x954   : > { %v2239_v58 = vmul.f32 %v3701_v16, %v2235_v44  ;;  %v2236_v0 = vadd.f32 0.2548296, %v2232_v59 }
 0x955   : > { %v2241_v33 = vmul.f32 %v3703_v12, %v2237_v57  ;;  %v2238_v7 = vadd.f32 0.2548296, %v2234_v3  ;;  %v3718_v3 = vld [vmem:[%s4871_s7] sm:$0xff] (!%p3205_p12)  }
 0x956   : > { %v2259_v63 = vmul.f32 %v3709_v61, %v2239_v58  ;;  %v2240_v6 = vmul.f32 %v3705_v18, %v2236_v0  ;;  %v2179_v18 = vmul.f32 0.5, %v4619_v48 }
 0x957   : > { %v2261_v4 = vmul.f32 %v3711_v62, %v2241_v33  ;;  %v2242_v10 = vmul.f32 %v3707_v25, %v2238_v7  ;;  %v3203_v33 = vld [vmem:[%s839_s5] ss:$0 sm:$0xff] }
 0x958   : > { %v2263_v5 = vsub.f32 1.0, %v2259_v63  ;;  %v2260_v13 = vmul.f32 %v3713_v8, %v2240_v6  ;;  %v3720_v8 = vld [vmem:[%s4871_s7 + $0x10] sm:$0xff] (!%p3205_p12)  }
 0x959   : > { %v2265_v9 = vsub.f32 1.0, %v2261_v4  ;;  %v2262_v17 = vmul.f32 %v3715_v14, %v2242_v10  ;;  %v3963_v4 = vmov (!%p3205_p12), 0.0  }
 0x95a   : > { %v2271_v11 = vsub.f32 0.0, %v2263_v5  ;;  %v2264_v12 = vsub.f32 1.0, %v2260_v13  ;;  %3410 = vmatprep.subr.bf16.mxu0 (!%p3205_p12), %v3963_v4  ;;  %v3721_v13 = vld [vmem:[%s4871_s7 + $0x18] sm:$0xff] (!%p3205_p12)  }
 0x95b   : > { %v2273_v16 = vsub.f32 0.0, %v2265_v9  ;;  %v2266_v22 = vsub.f32 1.0, %v2262_v17  ;;  %v3724_v17 = vld [vmem:[%s4871_s7 + $0x30] sm:$0xff] (!%p3205_p12)  }
 0x95c   : > { %v2275_v15 = vsel %vm2267_vm4, %v2271_v11, %v2263_v5  ;;  %v2272_v21 = vsub.f32 0.0, %v2264_v12  ;;  %v3719_v5 = vld [vmem:[%s4871_s7 + $0x8] sm:$0xff] (!%p3205_p12)  }
 0x95d   : > { %v2277_v19 = vsel %vm2269_vm5, %v2273_v16, %v2265_v9  ;;  %v2279_v20 = vadd.f32 1.0, %v2275_v15  ;;  %v2274_v25 = vsub.f32 0.0, %v2266_v22  ;;  %v3722_v16 = vld [vmem:[%s4871_s7 + $0x20] sm:$0xff] (!%p3205_p12)  }
 0x95e   : > { %v2281_v23 = vadd.f32 1.0, %v2277_v19  ;;  %v2276_v24 = vsel %vm2268_vm6, %v2272_v21, %v2264_v12  ;;  %v3723_v12 = vld [vmem:[%s4871_s7 + $0x28] sm:$0xff] (!%p3205_p12)   ;;  %v3725_v19 = vld [vmem:[%s4871_s7 + $0x38] sm:$0xff] (!%p3205_p12)   ;;  %v2693_v21 = vld [vmem:[%s4872_s20] sm:$0x1] (!%p3205_p12) }
 0x95f   : > { %v2280_v1 = vadd.f32 1.0, %v2276_v24  ;;  %v2283_v31 = vmul.f32 %v2279_v20, %v2179_v18  ;;  %v2278_v27 = vsel %vm2270_vm7, %v2274_v25, %v2266_v22 }
 0x960   : > { %v2282_v30 = vadd.f32 1.0, %v2278_v27  ;;  %v2285_v46 = vmul.f32 %v2281_v23, %v2181_v43 }
 0x961   : > { %v2284_v29 = vmul.f32 %v2280_v1, %v2180_v26  ;;  %v2287_v34 = vpack.c.bf16 %v2283_v31, %v2283_v31 }
 0x962   : > { %v2286_v48 = vmul.f32 %v2282_v30, %v2182_v28  ;;  %v2289_v36 = vpack.c.bf16 %v2285_v46, %v2285_v46 }
 0x963   : > { %v2288_v32 = vpack.c.bf16 %v2284_v29, %v2284_v29 }
 0x964   : > { %v2290_v35 = vpack.c.bf16 %v2286_v48, %v2286_v48 }
 0x965   : > { %2586 = vmatprep.mubr.bf16.mxu0 %v2288_v32 }
 0x966   : > { %2587 = vmatmul.mubr.bf16.vlgmr.msra.gmra.mrb[32].mxu0 %v2287_v34  ;;  %2626 = vmatprep.mubr.bf16.mxu1 %v2290_v35 }
 0x967   : > { %2627 = vmatmul.mubr.bf16.vlgmr.msra.gmra.mrb[32].mxu1 %v2289_v36  ;;  %3411 = vmatpush3.bf16.msra.mxu0 (!%p3205_p12), %v3718_v3 }
 0x968   : > { %3426 = vmatprep.mubr.msk.bf16.mxu0 (!%p3205_p12), %vm3964_vm8, %v3963_v4  ;;  %3412 = vmatprep.subr.bf16.mxu0 (!%p3205_p12), %v3963_v4 }
 0x96b   : > { %3413 = vmatpush3.bf16.msra.mxu0 (!%p3205_p12), %v3719_v5 }
 0x96c   : > { %3414 = vmatprep.subr.bf16.mxu0 (!%p3205_p12), %v3963_v4 }
 0x96f   : > { %3415 = vmatpush3.bf16.msra.mxu0 (!%p3205_p12), %v3720_v8 }
 0x970   : > { %3416 = vmatprep.subr.bf16.mxu0 (!%p3205_p12), %v3963_v4 }
 0x973   : > { %3417 = vmatpush3.bf16.msra.mxu0 (!%p3205_p12), %v3721_v13 }
 0x974   : > { %3418 = vmatprep.subr.bf16.mxu0 (!%p3205_p12), %v3963_v4 }
 0x977   : > { %3419 = vmatpush3.bf16.msra.mxu0 (!%p3205_p12), %v3722_v16 }
 0x978   : > { %3420 = vmatprep.subr.bf16.mxu0 (!%p3205_p12), %v3963_v4 }
 0x97b   : > { %3421 = vmatpush3.bf16.msra.mxu0 (!%p3205_p12), %v3723_v12 }
 0x97c   : > { %3422 = vmatprep.subr.bf16.mxu0 (!%p3205_p12), %v3963_v4 }
 0x97f   : > { %3423 = vmatpush3.bf16.msra.mxu0 (!%p3205_p12), %v3724_v17 }
 0x980   : > { %3424 = vmatprep.subr.bf16.mxu0 (!%p3205_p12), %v3963_v4 }
 0x983   : > { %3425 = vmatpush3.bf16.msra.mxu0 (!%p3205_p12), %v3725_v19 }
 0xa39   : > { %v3273_v52 = vpop.f32.mrb[32].mxu0 }
 0xa3a   : > { %v3274_v55 = vpop.f32.mrb[33].mxu0  ;;  %v3295_v53 = vpop.f32.mrb[32].mxu1 }
 0xa3b   : > { %v3275_v37 = vadd.f32 %v3274_v55, %v3273_v52  ;;  %v3276_v38 = vpop.f32.mrb[34].mxu0  ;;  %v3296_v39 = vpop.f32.mrb[33].mxu1 }
 0xa3c   : > { %v3277_v40 = vpop.f32.mrb[35].mxu0  ;;  %v3297_v42 = vadd.f32 %v3296_v39, %v3295_v53  ;;  %v3298_v45 = vpop.f32.mrb[34].mxu1 }
 0xa3d   : > { %v2589_v41 = vadd.f32 %v3275_v37, %v3170_v49  ;;  %v3299_v47 = vpop.f32.mrb[35].mxu1 }
 0xa3f   : > { %v2629_v50 = vadd.f32 %v3297_v42, %v2589_v41 }
 0xa41   : > { %v2634_v51 = vadd.f32 %v2629_v50, %v4575_v2  ;;  %v3204_v2 = vld [vmem:[%s842_s25] ss:$0 sm:$0xff] }
 0xa43   : > { %2637 = vadd.xlane.f32.xlu0 %v2634_v51 }
 0xad0   : > { %v2638_v44 = vpop.xlane.xlu0 %2637 }
 0xad1   : > { %v2639_v54 = vmul.f32 0.0078125, %v2638_v44 }
 0xad3   : > { %v2640_v56 = vsub.f32 %v2634_v51, %v2639_v54 }
 0xad5   : > { %v2641_v57 = vmul.f32 %v2640_v56, %v2640_v56 }
 0xad7   : > { %2642 = vadd.xlane.f32.xlu1 %v2641_v57 }
 0xb64   : > { %v2643_v58 = vpop.xlane.xlu1 %2642 }
 0xb65   : > { %v2644_v59 = vmul.f32 0.0078125, %v2643_v58 }
 0xb67   : > { %v2645_v60 = vadd.f32 1e-12, %v2644_v59 }
 0xb69   : > { %3716 = vrsqrt.f32 %v2645_v60 }
 0xb73   : > { %v3717_v61 = vpop.eup %3716 }
 0xb74   : > { %v2647_v62 = vmul.f32 %v3717_v61, %v2640_v56  ;;  %2666 = sbr.rel (%p3205_p12) target bundleno = 3217 (0xc91), region = 108 }
 0xb76   : > { %v2654_v63 = vmul.f32 %v3203_v33, %v2647_v62 }
 0xb78   : > { %v2661_v0 = vadd.f32 %v3204_v2, %v2654_v63 }
 0xb7a   : > { %2662 = vst [vmem:[#allocation2] sm:$0xff] %v2661_v0  ;;  %v2667_v6 = vrot.slane (!%p3205_p12), %v2661_v0, 4 }
 0xb7c   : > { %v2668_v7 = vadd.f32 %v2667_v6, %v2661_v0 }
 0xb7e   : > { %v2669_v9 = vrot.slane %v2668_v7, 2 }
 0xb80   : > { %v2670_v11 = vadd.f32 %v2669_v9, %v2668_v7 }
 0xb82   : > { %v2671_v10 = vrot.slane %v2670_v11, 1 }
 0xb84   : > { %v2672_v14 = vadd.f32 %v2671_v10, %v2670_v11 }
 0xb86   : > { %v2674_v15 = vmul.f32 0.125, %v2672_v14 }
 0xb88   : > { %2675 = vst [vmem:[%s4373_s13] sm:$0x1] %v2674_v15  ;;  %v2676_v20 = vpack.c.bf16 %v2674_v15, %v2674_v15 }
 0xb8a   : > { %3427 = vmatmul.mubr.bf16.vlgmr.msra.gmra.mrb[0].mxu0 %v2676_v20 }
 0xc5d   : > { %v2776_v22 = vpop.f32.mrb[0].mxu0 }
 0xc5e   : > { %v2777_v18 = vadd.f32 %v2776_v22, %v2693_v21  ;;  %v3428_v23 = vpop.f32.mrb[1].mxu0 }
 0xc5f   : > { %v2779_v24 = vpop.f32.mrb[2].mxu0 }
 0xc60   : > { %v2783_v25 = vmul.f32 0.70710677, %v2777_v18  ;;  %v3429_v26 = vpop.f32.mrb[3].mxu0  ;;  %v2782_v41 = vmul.f32 0.5, %v2777_v18 }
 0xc62   : > { %v2784_v1 = vand.u32 2147483647, %v2783_v25  ;;  %vm2804_vm9 = vcmp.lt.f32.partialorder %v2783_v25, 0.0 }
 0xc64   : > { %v2785_v31 = vmul.f32 0.3275911, %v2784_v1  ;;  %v2798_v27 = vsub.f32 0.0, %v2784_v1 }
 0xc66   : > { %v2786_v43 = vadd.f32 1.0, %v2785_v31  ;;  %v2799_v29 = vmul.f32 %v2798_v27, %v2784_v1 }
 0xc68   : > { %3726 = vrcp.f32 %v2786_v43  ;;  %v2800_v32 = vmul.f32 1.442695, %v2799_v29 }
 0xc6a   : > { %3728 = vpow2.f32 %v2800_v32 }
 0xc72   : > { %v3727_v28 = vpop.eup %3726 }
 0xc73   : > { %v2789_v30 = vmul.f32 1.0614054, %v3727_v28 }
 0xc74   : > { %v3729_v53 = vpop.eup %3728 }
 0xc75   : > { %v2790_v46 = vadd.f32 -1.4531521, %v2789_v30 }
 0xc77   : > { %v2791_v48 = vmul.f32 %v3727_v28, %v2790_v46 }
 0xc79   : > { %v2792_v34 = vadd.f32 1.4214138, %v2791_v48 }
 0xc7b   : > { %v2793_v35 = vmul.f32 %v3727_v28, %v2792_v34 }
 0xc7d   : > { %v2794_v36 = vadd.f32 -0.28449672, %v2793_v35 }
 0xc7f   : > { %v2795_v52 = vmul.f32 %v3727_v28, %v2794_v36 }
 0xc81   : > { %v2796_v49 = vadd.f32 0.2548296, %v2795_v52 }
 0xc83   : > { %v2797_v55 = vmul.f32 %v3727_v28, %v2796_v49 }
 0xc85   : > { %v2802_v37 = vmul.f32 %v3729_v53, %v2797_v55 }
 0xc87   : > { %v2803_v38 = vsub.f32 1.0, %v2802_v37 }
 0xc89   : > { %v2805_v39 = vsub.f32 0.0, %v2803_v38 }
 0xc8b   : > { %v2806_v40 = vsel %vm2804_vm9, %v2805_v39, %v2803_v38 }
 0xc8c   : > { %v2807_v42 = vadd.f32 1.0, %v2806_v40 }
 0xc8e   : > { %v2808_v45 = vmul.f32 %v2807_v42, %v2782_v41 }
 0xc90   : > { %2809 = vst [vmem:[%s4875_s4] sm:$0x1] %v2808_v45 }
 0xc91 PF: > { %s4876_s18 = sld [smem:[#allocation17_spill]]  ;;  %s4877_s12 = sld [smem:[#allocation25_spill]] }
 0xc92   : > { %s4878_s5 = sld [smem:[#allocation44_spill]]  ;;  %s2826_s1 = sshll.u32 %s4373_s13, 4  ;;  %s2827_s1 = int_to_ptr.vmem [resolvable:$true] %s2826_s1 }
 0xc93   : > { %s4879_s23 = sand.u32 1, %s3910_s28   ;;  %s3820_s16 = scalar_lea.vmem %s2827_s1, 16 }
 0xc94   : > { %s2811_s25 = scalar_lea.sflag [#allocation5], %s4879_s23  ;;  %p3821_p7 = scmp.ne.s32.totalorder %s2827_s1, %s3820_s16 }
 0xc95   : > { %s3965_s9 = smov [#allocation9]  }
 0xc96   : > { %s3824_s15 = sshll.u32 %s3965_s9, 4  ;;  %s3825_s15 = int_to_ptr.vmem [resolvable:$false] %s3824_s15 }
 0xc97   : > { %s3214_s8 = sshll.u32 %s4876_s18, 4  ;;  %p4880_p11 = scmp.ne.s32.totalorder %s4877_s12, 0 }
 0xc98   : > { %s4705_s3 = scalar_lea.hbm %s4878_s5, %s3214_s8  ;;  %s3826_s26 = scalar_lea.vmem %s3825_s15, 32 }
 0xc99   : > { %p3822_p0 = pnand %p3821_p7, %p4880_p11  ;;  %p3827_p13 = scmp.lt.s32.totalorder %s2827_s1, %s3825_s15 }
 0xc9a   : > { %p3828_p2 = scmp.lt.s32.totalorder %s3826_s26, %s3820_s16 }
 0xc9b   : > { %p3823_p1 = pneg %p3822_p0 }
 0xc9c   : > { %p3829_p6 = por %p3828_p2, %p3827_p13 }
 0xc9e   : > { %p3830_p9 = pnand %p3829_p6, %p3823_p1 }
 0xca0   : > { %3833 = shalt.err (!%p3830_p9)
}
 0xca1   : > { %s3834_s13 = scalar_lea.hbm %s4705_s3, 16  ;;  %s3838_s30 = scalar_lea.hbm %s4878_s5, 32 }
 0xca2   : > { %p3835_p5 = scmp.ne.s32.totalorder %s4705_s3, %s3834_s13  ;;  %p3839_p10 = scmp.lt.u32.totalorder %s4705_s3, %s4878_s5 }
 0xca3   : > { %p3840_p8 = scmp.lt.u32.totalorder %s3838_s30, %s3834_s13  ;;  %p3842_p7 = scmp.lt.u32.totalorder %s3834_s13, %s4705_s3 }
 0xca4   : > { %p3836_p3 = pnand %p3835_p5, %p4880_p11 }
 0xca5   : > { %p3841_p12 = por %p3840_p8, %p3839_p10 }
 0xca6   : > { %p3837_p4 = pneg %p3836_p3 }
 0xca7   : > { %p3843_p0 = por %p3842_p7, %p3841_p12 }
 0xca9   : > { %p3844_p1 = pnand %p3843_p0, %p3837_p4 }
 0xcab   : > { %3847 = shalt.err (!%p3844_p1)
}
 0xcac   : > { %3440 = dma.vmem_to_hbm [thread:$0]  (%p4880_p11), %s2827_s1, 16, %s4705_s3, %s2811_s25  }
 0xcad PF: > { %s4881_s14 = sld [smem:[#allocation20_spill]]  ;;  %s4882_s22 = sld [smem:[#allocation13_spill]] }
 0xcae   : > { %s4883_s20 = sld [smem:[#allocation26_spill]] }
 0xcb3   : > { %p3457_p13 = scmp.ge.s32.totalorder %s4881_s14, 2  ;;  %s2841_s21 = sand.u32 1, %s4882_s22  }
 0xcb4   : > { %p4884_p2 = scmp.ne.s32.totalorder %s4883_s20, 0  ;;  %s2842_s29 = scalar_lea.sflag [#allocation5], %s2841_s21 }
 0xcb6   : > { %p3453_p6 = pnand %p3457_p13, %p4884_p2 }
 0xcb8   : > { %3901 = dma.done.wait (!%p3453_p6), %s2842_s29, 16  }
 0xcb9   : > { %3903 = vsyncadd (!%p3453_p6), %s2842_s29, 4294967280  ;;  %s38_s2 = sadd.s32 1, %s4881_s14   ;;  %s4885_s24 = sld [smem:[#allocation14_spill]] }
 0xcba   : > { %p35_p9 = scmp.ge.s32.totalorder %s38_s2, 6   ;;  %s4886_s29 = sld [smem:[#allocation24_spill]] }
 0xcbb   : > { %s4887_s30 = sld [smem:[#allocation15_spill]]  ;;  %s4888_s0 = sld [smem:[#allocation16_spill]] }
 0xcbc   : > { %s4889_s19 = sld [smem:[#allocation23_spill]]  ;;  %s4890_s1 = sld [smem:[#allocation18_spill]] }
 0xcbd   : > { %s4891_s20 = sld [smem:[#allocation19_spill]]  ;;  %s4892_s21 = sld [smem:[#allocation21_spill]] }
 0xcbe   : > { %s4893_s22 = sld [smem:[#allocation22_spill]]  ;;  %s4894_s27 = smov %s3910_s28 }
 0xcbf   : > { %s4895_s28 = smov %s4885_s24  ;;  %37 = sbr.rel (!%p35_p9) target bundleno = 30 (0x1e), region = 207 }
 0xcc6   :  { %2852 = vsyncpa [#allocation4], 1 }
 0xcc7   :  { %2854 = vsyncpa [#allocation4 + $0x1], 1 }
 0xcc8   :  { %2855 = vsyncpa [#allocation7], 1 }
 0xcc9   :  { %2857 = vsyncpa [#allocation7 + $0x1], 1 }
 0xcca   :  { %2858 = vsyncpa [#allocation5], 1 }
 0xccb   :  { %2860 = vsyncpa [#allocation5 + $0x1], 1 }

</bundles_post_ra>
